<compile_context>
chip_gen: v7x
topology: tpu7x:2x2x1
jax: 0.10.0
libtpu: 0.0.40
codegen_flags: <defaults>
</compile_context>

<pallas_src>
import jax
import jax.numpy as jnp
from jax.experimental import pallas as pl
from jax.experimental.pallas import tpu as pltpu


def _round_up(a, m):
    return (a + m - 1) // m * m


def _vmem_budget_bytes():
    """Per-core VMEM budget with headroom for Mosaic internal scratch."""
    try:
        cap = int(pltpu.get_tpu_info().vmem_capacity_bytes)
    except Exception:
        cap = 64 * 1024 * 1024          # conservative default (v7x per-TC VMEM)
    cap = max(cap, 32 * 1024 * 1024)
    return (cap * 2) // 3


# --------------------------------------------------------------------------- #
# Fused single-pass kernel: the (Bblk, C, N) slab is resident in VMEM.
# --------------------------------------------------------------------------- #
def _fused_kernel(gamma_ref, x_ref, w1_ref, w2_ref, o_ref):
    gamma = gamma_ref[0]
    w1 = w1_ref[...]                                          # (Ch, C)
    w2 = w2_ref[...]                                          # (C, Ch)
    hp = jax.lax.Precision.HIGHEST
    inv_n = 1.0 / float(x_ref.shape[2])

    for bb in range(x_ref.shape[0]):                          # static unroll (small Bblk)
        xc = x_ref[bb]                                        # (C, N) f32

        # ---- L_Channel: avg/max pool -> shared tiny MLP -> sigmoid ---------
        avg = jnp.sum(xc, axis=-1, keepdims=True) * inv_n     # (C, 1)
        mx = jnp.max(xc, axis=-1, keepdims=True)              # (C, 1)
        h = (jnp.maximum(jnp.dot(w1, avg, precision=hp,
                                 preferred_element_type=jnp.float32), 0.0) +
             jnp.maximum(jnp.dot(w1, mx, precision=hp,
                                 preferred_element_type=jnp.float32), 0.0))   # (Ch, 1)
        logits = jnp.dot(w2, h, precision=hp,
                         preferred_element_type=jnp.float32)  # (C, 1)
        s = 1.0 / (1.0 + jnp.exp(-logits))                    # sigmoid -> l_score

        lx = s * xc + xc                                      # l_x (f32, like the ref)
        lxb = lx.astype(jnp.bfloat16)                         # bf16 MXU operand

        # ---- G_Channel on l_x ----------------------------------------------
        aff = jax.lax.dot_general(lxb, lxb, (((1,), (1,)), ((), ())),
                                  preferred_element_type=jnp.float32)  # (C, C)
        # softmax(rowmax(A) - A) == softmax(-A); stable form exp(rowmin - A).
        e = jnp.exp(jnp.min(aff, axis=-1, keepdims=True) - aff)
        inv_den = pl.reciprocal(jnp.sum(e, axis=-1, keepdims=True), approx=True)
        att_g = (gamma * e * inv_den).astype(jnp.bfloat16)    # gamma folded in

        wsum = jnp.dot(att_g, lxb, preferred_element_type=jnp.float32)  # (C, N)
        o_ref[bb] = (wsum + lx + xc).astype(o_ref.dtype)      # + l_x + shortcut (f32)


# --------------------------------------------------------------------------- #
# Streaming fallback, pass 1: pooled stats + Gram accumulation over N chunks,
# then the L_Channel MLP, affinity scaling and softmax.  Emits
#   att_out = (gamma * att * (1+s)_row)  in bf16   and   s (C,1) in f32.
# --------------------------------------------------------------------------- #
def _stream_stats_kernel(nvalid_ref, gamma_ref, x_ref, w1_ref, w2_ref, w2t_ref,
                         att_ref, s_ref, gram_acc, sum_acc, max_acc):
    k = pl.program_id(1)
    nk = pl.num_programs(1)
    TN = x_ref.shape[2]

    @pl.when(k == 0)
    def _init():
        gram_acc[...] = jnp.zeros_like(gram_acc)
        sum_acc[...] = jnp.zeros_like(sum_acc)
        max_acc[...] = jnp.full_like(max_acc, -jnp.inf)

    xc = x_ref[0]                                             # (C, TN) f32

    # Streaming accumulation (zero padding is neutral for sum and Gram).
    xb = xc.astype(jnp.bfloat16)
    gram_acc[...] += jax.lax.dot_general(                     # X X^T, f32 accumulate
        xb, xb, (((1,), (1,)), ((), ())),
        preferred_element_type=jnp.float32)
    sum_acc[...] += jnp.sum(xc, axis=-1, keepdims=True)

    @pl.when(k < nk - 1)
    def _max_plain():                                         # no padded lanes here
        max_acc[...] = jnp.maximum(max_acc[...],
                                   jnp.max(xc, axis=-1, keepdims=True))

    @pl.when(k == nk - 1)
    def _finalize():
        # Padded lanes only ever live in the last chunk -> mask the max here.
        col = k * TN + jax.lax.broadcasted_iota(jnp.int32, (1, TN), 1)
        xm = jnp.where(col < nvalid_ref[0], xc, -jnp.inf)
        mx = jnp.maximum(max_acc[...], jnp.max(xm, axis=-1, keepdims=True))

        inv_n = 1.0 / nvalid_ref[0].astype(jnp.float32)
        avg = sum_acc[...] * inv_n                            # (C, 1)

        w1 = w1_ref[...]                                      # (Ch, C)
        w2 = w2_ref[...]                                      # (C, Ch)
        w2t = w2t_ref[...]                                    # (Ch, C)
        hp = jax.lax.Precision.HIGHEST

        h = (jnp.maximum(jnp.dot(w1, avg, precision=hp,
                                 preferred_element_type=jnp.float32), 0.0) +
             jnp.maximum(jnp.dot(w1, mx, precision=hp,
                                 preferred_element_type=jnp.float32), 0.0))   # (Ch, 1)
        logits = jnp.dot(w2, h, precision=hp,
                         preferred_element_type=jnp.float32)  # (C, 1)
        s = 1.0 / (1.0 + jnp.exp(-logits))
        scale_col = 1.0 + s                                   # (C, 1)

        # Row form of the scale via a tiny (Ch,Ch) diagonal transpose + w2^T,
        # instead of materializing C x C temporaries in the finalize step.
        Ch = h.shape[0]
        ri = jax.lax.broadcasted_iota(jnp.int32, (Ch, Ch), 0)
        ci = jax.lax.broadcasted_iota(jnp.int32, (Ch, Ch), 1)
        h_row = jnp.sum(jnp.where(ri == ci, h, 0.0),
                        axis=0, keepdims=True)                # (1, Ch)
        logits_row = jnp.dot(h_row, w2t, precision=hp,
                             preferred_element_type=jnp.float32)   # (1, C)
        scale_row = 1.0 + 1.0 / (1.0 + jnp.exp(-logits_row))  # (1, C)

        # affinity of l_x = diag(1+s) X:  A = (1+s)(1+s)^T * (X X^T)
        aff = gram_acc[...] * scale_col * scale_row           # (C, C)
        e = jnp.exp(jnp.min(aff, axis=-1, keepdims=True) - aff)
        inv_den = pl.reciprocal(jnp.sum(e, axis=-1, keepdims=True), approx=True)

        # Fold gamma AND the column scale (1+s) of l_x into the bf16 output:
        # (gamma*att*scale_row) @ x == gamma*att @ l_x.
        att_ref[0] = (gamma_ref[0] * e * inv_den * scale_row).astype(jnp.bfloat16)
        s_ref[0] = s


# --------------------------------------------------------------------------- #
# Streaming fallback, pass 2: out_chunk = att_out @ x_chunk + (2+s)*x_chunk
# --------------------------------------------------------------------------- #
def _stream_apply_kernel(att_ref, s_ref, x_ref, o_ref):
    xc = x_ref[0]                                             # (C, TN) f32
    wsum = jnp.dot(att_ref[0], xc.astype(jnp.bfloat16),       # bf16 @ bf16 -> f32
                   preferred_element_type=jnp.float32)
    o_ref[0] = (wsum + (2.0 + s_ref[0]) * xc).astype(o_ref.dtype)


# --------------------------------------------------------------------------- #
# Wrapper
# --------------------------------------------------------------------------- #
def attention_fusion(x, gamma, w1, w2, *, tn_cap=2048, force_streaming=False):
    """x: (B,C,H,W); gamma: (1,); w1: (C//16, C); w2: (C, C//16)."""
    B, C, H, W = x.shape
    Ch = w1.shape[0]
    N = H * W

    x_flat = x.astype(jnp.float32).reshape(B, C, N)
    gamma = jnp.asarray(gamma, jnp.float32).reshape(1)
    w1 = w1.astype(jnp.float32)
    w2 = w2.astype(jnp.float32)

    budget = _vmem_budget_bytes()

    # Rough per-batch working set of the fused path (bytes):
    #   double-buffered x in + out (16 C N) + lx f32/bf16 + wsum (10 C N)
    #   + aff/e/att temporaries (~12 C^2) + weights.
    per_batch = 26 * C * N + 12 * C * C + 8 * C * Ch

    if (not force_streaming) and per_batch <= budget:
        # ------------------------- fused single pass ------------------------ #
        bblk = 1
        for d in range(min(B, 8), 0, -1):                     # amortize grid steps
            if B % d == 0 and d * per_batch <= budget:
                bblk = d
                break

        out = pl.pallas_call(
            _fused_kernel,
            out_shape=jax.ShapeDtypeStruct((B, C, N), jnp.float32),
            grid_spec=pltpu.PrefetchScalarGridSpec(
                num_scalar_prefetch=1,                        # gamma -> SMEM
                grid=(B // bblk,),
                in_specs=[
                    pl.BlockSpec((bblk, C, N), lambda i, g: (i, 0, 0)),
                    pl.BlockSpec((Ch, C), lambda i, g: (0, 0)),
                    pl.BlockSpec((C, Ch), lambda i, g: (0, 0)),
                ],
                out_specs=pl.BlockSpec((bblk, C, N), lambda i, g: (i, 0, 0)),
            ),
            compiler_params=pltpu.CompilerParams(
                dimension_semantics=("parallel",),
                vmem_limit_bytes=budget),
        )(gamma, x_flat, w1, w2)
        return out.reshape(B, C, H, W)

    # --------------------- streaming two-pass fallback ---------------------- #
    Npad = _round_up(N, 128)
    max_tn_budget = max(128, ((budget - 16 * C * C) // (20 * C)) // 128 * 128)
    max_tn = min(tn_cap, max_tn_budget, Npad)
    TN = 128                                                  # 128 always divides Npad
    for t in range(256, max_tn + 1, 128):
        if Npad % t == 0:
            TN = t
    Nk = Npad // TN

    if Npad != N:
        # TODO(synk): the streaming fallback still pays one pad copy for ragged N
        # (<=127 lanes); the fused path (the common case) avoids padding entirely.
        x_in = jnp.pad(x_flat, ((0, 0), (0, 0), (0, Npad - N)))
    else:
        x_in = x_flat

    nvalid = jnp.array([N], dtype=jnp.int32)
    w2t = jnp.transpose(w2)                                   # (Ch, C), tiny

    att_g, l_score = pl.pallas_call(
        _stream_stats_kernel,
        out_shape=(jax.ShapeDtypeStruct((B, C, C), jnp.bfloat16),
                   jax.ShapeDtypeStruct((B, C, 1), jnp.float32)),
        grid_spec=pltpu.PrefetchScalarGridSpec(
            num_scalar_prefetch=2,                            # nvalid, gamma -> SMEM
            grid=(B, Nk),
            in_specs=[
                pl.BlockSpec((1, C, TN), lambda b, k, nv, g: (b, 0, k)),
                pl.BlockSpec((Ch, C), lambda b, k, nv, g: (0, 0)),
                pl.BlockSpec((C, Ch), lambda b, k, nv, g: (0, 0)),
                pl.BlockSpec((Ch, C), lambda b, k, nv, g: (0, 0)),
            ],
            out_specs=[
                pl.BlockSpec((1, C, C), lambda b, k, nv, g: (b, 0, 0)),
                pl.BlockSpec((1, C, 1), lambda b, k, nv, g: (b, 0, 0)),
            ],
            scratch_shapes=[
                pltpu.VMEM((C, C), jnp.float32),              # Gram accumulator
                pltpu.VMEM((C, 1), jnp.float32),              # sum pool
                pltpu.VMEM((C, 1), jnp.float32),              # max pool
            ]),
        compiler_params=pltpu.CompilerParams(
            dimension_semantics=("parallel", "arbitrary"),
            vmem_limit_bytes=budget),
    )(nvalid, gamma, x_in, w1, w2, w2t)

    out_flat = pl.pallas_call(
        _stream_apply_kernel,
        out_shape=jax.ShapeDtypeStruct((B, C, Npad), jnp.float32),
        grid=(B, Nk),
        in_specs=[
            pl.BlockSpec((1, C, C), lambda b, k: (b, 0, 0)),
            pl.BlockSpec((1, C, 1), lambda b, k: (b, 0, 0)),
            pl.BlockSpec((1, C, TN), lambda b, k: (b, 0, k)),
        ],
        out_specs=pl.BlockSpec((1, C, TN), lambda b, k: (b, 0, k)),
        compiler_params=pltpu.CompilerParams(
            dimension_semantics=("parallel", "parallel"),
            vmem_limit_bytes=budget),
    )(att_g, l_score, x_in)

    if Npad != N:
        out_flat = out_flat[:, :, :N]
    return out_flat.reshape(B, C, H, W)


# --------------------------------------------------------------------------- #
# Pure-JAX reference mirroring the PyTorch AttentionFusion forward (f32).
# --------------------------------------------------------------------------- #
def attention_fusion_ref(x, gamma, w1, w2):
    B, C, H, W = x.shape
    avg = jnp.mean(x, axis=(2, 3))                            # (B, C)
    mx = jnp.max(x, axis=(2, 3))                              # (B, C)

    def mlp(v):
        h = jnp.maximum(jnp.dot(v, w1.T, precision=jax.lax.Precision.HIGHEST), 0.0)
        return jnp.dot(h, w2.T, precision=jax.lax.Precision.HIGHEST)

    l_score = jax.nn.sigmoid(mlp(avg) + mlp(mx))[:, :, None, None]
    l_x = l_score * x + x
    q = l_x.reshape(B, C, -1)
    aff = jnp.matmul(q, jnp.transpose(q, (0, 2, 1)))
    aff_new = jnp.max(aff, -1, keepdims=True) - aff
    att = jax.nn.softmax(aff_new, axis=-1)
    w = jnp.matmul(att, q).reshape(B, C, H, W)
    g = gamma[0] * w + l_x
    return g + x


if __name__ == "__main__":
    key = jax.random.PRNGKey(0)
    kx, kw1, kw2, kx2 = jax.random.split(key, 4)

    # C must be >= 16: L_Channel hardcodes a C // 16 hidden width.
    B, C, H, W = 2, 32, 16, 16
    Ch = C // 16
    x = 0.1 * jax.random.normal(kx, (B, C, H, W), dtype=jnp.float32)
    w1 = 0.5 * jax.random.normal(kw1, (Ch, C), dtype=jnp.float32)   # fc1 1x1 conv, no bias
    w2 = 0.5 * jax.random.normal(kw2, (C, Ch), dtype=jnp.float32)   # fc2 1x1 conv, no bias
    x2 = 0.1 * jax.random.normal(kx2, (1, C, 12, 12), dtype=jnp.float32)

    gamma0 = jnp.zeros((1,), jnp.float32)
    gamma1 = jnp.full((1,), 0.5, jnp.float32)

    # 1) fused path, gamma = 0 (module init): attention branch exactly zero,
    #    everything else is f32 -> must match the reference tightly.
    out = attention_fusion(x, gamma0, w1, w2)
    jax.block_until_ready(out)
    ref = attention_fusion_ref(x, gamma0, w1, w2)
    assert jnp.allclose(out, ref, atol=1e-4, rtol=1e-4), "fused gamma=0 mismatch"

    # 2) fused path, gamma != 0 exercises the bf16 MXU path.
    out = attention_fusion(x, gamma1, w1, w2)
    jax.block_until_ready(out)
    ref = attention_fusion_ref(x, gamma1, w1, w2)
    assert jnp.allclose(out, ref, atol=1e-2, rtol=5e-2), "fused gamma=0.5 mismatch"

    # 3) fused path with a spatial size that is not a multiple of 128 (no pad).
    out = attention_fusion(x2, gamma1, w1, w2)
    jax.block_until_ready(out)
    ref = attention_fusion_ref(x2, gamma1, w1, w2)
    assert jnp.allclose(out, ref, atol=1e-2, rtol=5e-2), "fused ragged-N mismatch"

    # 4) streaming fallback (forced), N a multiple of 128 -> chunked, no pad.
    out = attention_fusion(x, gamma1, w1, w2, tn_cap=128, force_streaming=True)
    jax.block_until_ready(out)
    ref = attention_fusion_ref(x, gamma1, w1, w2)
    assert jnp.allclose(out, ref, atol=1e-2, rtol=5e-2), "streaming mismatch"

    # 5) streaming fallback with ragged N (exercises the pad + masked-max path).
    out = attention_fusion(x2, gamma1, w1, w2, tn_cap=128, force_streaming=True)
    jax.block_until_ready(out)
    ref = attention_fusion_ref(x2, gamma1, w1, w2)
    assert jnp.allclose(out, ref, atol=1e-2, rtol=5e-2), "streaming ragged-N mismatch"

    print("KERNEL_OK")
</pallas_src>

<mosaic_0001>
module attributes {stable_mosaic.version = 11 : i64} {
  func.func @_fused_kernel(%arg0: i32, %arg1: memref<1xf32, #tpu.memory_space<smem>>, %arg2: memref<2x32x256xf32, #tpu.memory_space<vmem>>, %arg3: memref<2x32xf32, #tpu.memory_space<vmem>>, %arg4: memref<32x2xf32, #tpu.memory_space<vmem>>, %arg5: memref<2x32x256xf32, #tpu.memory_space<vmem>>) attributes {dimension_semantics = [#tpu.dimension_semantics<parallel>], iteration_bounds = array<i64: 1>, scalar_prefetch = 1 : i64, scratch_operands = 0 : i64, tpu.core_type = #tpu.core_type<tc>, window_params = [{transform_indices = @transform_0, window_bounds = array<i64: 2, 32, 256>}, {pipeline_mode = #tpu.pipeline_mode<synchronous>, transform_indices = @transform_1, window_bounds = array<i64: 2, 32>}, {pipeline_mode = #tpu.pipeline_mode<synchronous>, transform_indices = @transform_2, window_bounds = array<i64: 32, 2>}, {transform_indices = @transform_3, window_bounds = array<i64: 2, 32, 256>}]} {
    %c0 = arith.constant 0 : index
    %0 = memref.load %arg1[%c0] : memref<1xf32, #tpu.memory_space<smem>>
    %c0_0 = arith.constant 0 : index
    %c0_1 = arith.constant 0 : index
    %1 = vector.load %arg3[%c0_0, %c0_1] : memref<2x32xf32, #tpu.memory_space<vmem>>, vector<2x32xf32>
    %c0_2 = arith.constant 0 : index
    %c0_3 = arith.constant 0 : index
    %2 = vector.load %arg4[%c0_2, %c0_3] : memref<32x2xf32, #tpu.memory_space<vmem>>, vector<32x2xf32>
    %c0_4 = arith.constant 0 : index
    %c0_5 = arith.constant 0 : index
    %c0_6 = arith.constant 0 : index
    %3 = vector.load %arg2[%c0_4, %c0_5, %c0_6] : memref<2x32x256xf32, #tpu.memory_space<vmem>>, vector<1x32x256xf32>
    %4 = vector.shape_cast %3 : vector<1x32x256xf32> to vector<32x256xf32>
    %cst = arith.constant dense<0.000000e+00> : vector<32xf32>
    %5 = vector.multi_reduction <add>, %4, %cst [1] : vector<32x256xf32> to vector<32xf32>
    %6 = vector.shape_cast %5 : vector<32xf32> to vector<32x1xf32>
    %cst_7 = arith.constant 3.906250e-03 : f32
    %7 = vector.broadcast %cst_7 : f32 to vector<32x1xf32>
    %8 = arith.mulf %6, %7 : vector<32x1xf32>
    %cst_8 = arith.constant dense<0xFF800000> : vector<32xf32>
    %9 = vector.multi_reduction <maximumf>, %4, %cst_8 [1] : vector<32x256xf32> to vector<32xf32>
    %10 = vector.shape_cast %9 : vector<32xf32> to vector<32x1xf32>
    %cst_9 = arith.constant dense<0.000000e+00> : vector<2x1xf32>
    %11 = tpu.matmul %1, %8, %cst_9 {dimension_numbers = #tpu.dot_dimension_numbers<[1], [0], [0], [1], [0, 0, 1, 1], [], []>, precision = #tpu.contract_precision<fp32>} : vector<2x32xf32>, vector<32x1xf32>, vector<2x1xf32> -> vector<2x1xf32>
    %cst_10 = arith.constant 0.000000e+00 : f32
    %12 = vector.broadcast %cst_10 : f32 to vector<2x1xf32>
    %13 = arith.maximumf %11, %12 : vector<2x1xf32>
    %cst_11 = arith.constant dense<0.000000e+00> : vector<2x1xf32>
    %14 = tpu.matmul %1, %10, %cst_11 {dimension_numbers = #tpu.dot_dimension_numbers<[1], [0], [0], [1], [0, 0, 1, 1], [], []>, precision = #tpu.contract_precision<fp32>} : vector<2x32xf32>, vector<32x1xf32>, vector<2x1xf32> -> vector<2x1xf32>
    %cst_12 = arith.constant 0.000000e+00 : f32
    %15 = vector.broadcast %cst_12 : f32 to vector<2x1xf32>
    %16 = arith.maximumf %14, %15 : vector<2x1xf32>
    %17 = arith.addf %13, %16 : vector<2x1xf32>
    %cst_13 = arith.constant dense<0.000000e+00> : vector<32x1xf32>
    %18 = tpu.matmul %2, %17, %cst_13 {dimension_numbers = #tpu.dot_dimension_numbers<[1], [0], [0], [1], [0, 0, 1, 1], [], []>, precision = #tpu.contract_precision<fp32>} : vector<32x2xf32>, vector<2x1xf32>, vector<32x1xf32> -> vector<32x1xf32>
    %cst_14 = arith.constant 0.000000e+00 : f32
    %19 = vector.broadcast %cst_14 : f32 to vector<32x1xf32>
    %20 = arith.subf %19, %18 : vector<32x1xf32>
    %21 = math.exp %20 : vector<32x1xf32>
    %cst_15 = arith.constant 1.000000e+00 : f32
    %22 = vector.broadcast %cst_15 : f32 to vector<32x1xf32>
    %23 = arith.addf %22, %21 : vector<32x1xf32>
    %cst_16 = arith.constant 1.000000e+00 : f32
    %24 = vector.broadcast %cst_16 : f32 to vector<32x1xf32>
    %25 = arith.divf %24, %23 : vector<32x1xf32>
    %26 = vector.broadcast %25 : vector<32x1xf32> to vector<32x256xf32>
    %27 = arith.mulf %26, %4 : vector<32x256xf32>
    %28 = arith.addf %27, %4 : vector<32x256xf32>
    %29 = arith.truncf %28 : vector<32x256xf32> to vector<32x256xbf16>
    %cst_17 = arith.constant dense<0.000000e+00> : vector<32x32xf32>
    %30 = tpu.matmul %29, %29, %cst_17 {dimension_numbers = #tpu.dot_dimension_numbers<[1], [1], [0], [0], [0, 0, 1, 0], [], []>} : vector<32x256xbf16>, vector<32x256xbf16>, vector<32x32xf32> -> vector<32x32xf32>
    %cst_18 = arith.constant dense<0x7F800000> : vector<32xf32>
    %31 = vector.multi_reduction <minimumf>, %30, %cst_18 [1] : vector<32x32xf32> to vector<32xf32>
    %32 = vector.shape_cast %31 : vector<32xf32> to vector<32x1xf32>
    %33 = vector.broadcast %32 : vector<32x1xf32> to vector<32x32xf32>
    %34 = arith.subf %33, %30 : vector<32x32xf32>
    %35 = math.exp %34 : vector<32x32xf32>
    %cst_19 = arith.constant dense<0.000000e+00> : vector<32xf32>
    %36 = vector.multi_reduction <add>, %35, %cst_19 [1] : vector<32x32xf32> to vector<32xf32>
    %37 = vector.shape_cast %36 : vector<32xf32> to vector<32x1xf32>
    %38 = tpu.reciprocal %37 {approx = true} : vector<32x1xf32> -> vector<32x1xf32>
    %39 = vector.broadcast %0 : f32 to vector<32x32xf32>
    %40 = arith.mulf %39, %35 : vector<32x32xf32>
    %41 = vector.broadcast %38 : vector<32x1xf32> to vector<32x32xf32>
    %42 = arith.mulf %40, %41 : vector<32x32xf32>
    %43 = arith.truncf %42 : vector<32x32xf32> to vector<32x32xbf16>
    %cst_20 = arith.constant dense<0.000000e+00> : vector<32x256xf32>
    %44 = tpu.matmul %43, %29, %cst_20 {dimension_numbers = #tpu.dot_dimension_numbers<[1], [0], [0], [1], [0, 0, 1, 1], [], []>} : vector<32x32xbf16>, vector<32x256xbf16>, vector<32x256xf32> -> vector<32x256xf32>
    %45 = arith.addf %44, %28 : vector<32x256xf32>
    %46 = arith.addf %45, %4 : vector<32x256xf32>
    %c0_21 = arith.constant 0 : index
    %c0_22 = arith.constant 0 : index
    %c0_23 = arith.constant 0 : index
    %47 = vector.load %arg5[%c0_21, %c0_22, %c0_23] : memref<2x32x256xf32, #tpu.memory_space<vmem>>, vector<1x32x256xf32>
    %48 = vector.shape_cast %47 : vector<1x32x256xf32> to vector<32x256xf32>
    %49 = vector.shape_cast %46 : vector<32x256xf32> to vector<1x32x256xf32>
    tpu.vector_store %arg5[%c0_21, %c0_22, %c0_23], %49 {strides = array<i32>} : memref<2x32x256xf32, #tpu.memory_space<vmem>>, vector<1x32x256xf32>,
    %c1 = arith.constant 1 : index
    %c0_24 = arith.constant 0 : index
    %c0_25 = arith.constant 0 : index
    %50 = vector.load %arg2[%c1, %c0_24, %c0_25] : memref<2x32x256xf32, #tpu.memory_space<vmem>>, vector<1x32x256xf32>
    %51 = vector.shape_cast %50 : vector<1x32x256xf32> to vector<32x256xf32>
    %cst_26 = arith.constant dense<0.000000e+00> : vector<32xf32>
    %52 = vector.multi_reduction <add>, %51, %cst_26 [1] : vector<32x256xf32> to vector<32xf32>
    %53 = vector.shape_cast %52 : vector<32xf32> to vector<32x1xf32>
    %cst_27 = arith.constant 3.906250e-03 : f32
    %54 = vector.broadcast %cst_27 : f32 to vector<32x1xf32>
    %55 = arith.mulf %53, %54 : vector<32x1xf32>
    %cst_28 = arith.constant dense<0xFF800000> : vector<32xf32>
    %56 = vector.multi_reduction <maximumf>, %51, %cst_28 [1] : vector<32x256xf32> to vector<32xf32>
    %57 = vector.shape_cast %56 : vector<32xf32> to vector<32x1xf32>
    %cst_29 = arith.constant dense<0.000000e+00> : vector<2x1xf32>
    %58 = tpu.matmul %1, %55, %cst_29 {dimension_numbers = #tpu.dot_dimension_numbers<[1], [0], [0], [1], [0, 0, 1, 1], [], []>, precision = #tpu.contract_precision<fp32>} : vector<2x32xf32>, vector<32x1xf32>, vector<2x1xf32> -> vector<2x1xf32>
    %cst_30 = arith.constant 0.000000e+00 : f32
    %59 = vector.broadcast %cst_30 : f32 to vector<2x1xf32>
    %60 = arith.maximumf %58, %59 : vector<2x1xf32>
    %cst_31 = arith.constant dense<0.000000e+00> : vector<2x1xf32>
    %61 = tpu.matmul %1, %57, %cst_31 {dimension_numbers = #tpu.dot_dimension_numbers<[1], [0], [0], [1], [0, 0, 1, 1], [], []>, precision = #tpu.contract_precision<fp32>} : vector<2x32xf32>, vector<32x1xf32>, vector<2x1xf32> -> vector<2x1xf32>
    %cst_32 = arith.constant 0.000000e+00 : f32
    %62 = vector.broadcast %cst_32 : f32 to vector<2x1xf32>
    %63 = arith.maximumf %61, %62 : vector<2x1xf32>
    %64 = arith.addf %60, %63 : vector<2x1xf32>
    %cst_33 = arith.constant dense<0.000000e+00> : vector<32x1xf32>
    %65 = tpu.matmul %2, %64, %cst_33 {dimension_numbers = #tpu.dot_dimension_numbers<[1], [0], [0], [1], [0, 0, 1, 1], [], []>, precision = #tpu.contract_precision<fp32>} : vector<32x2xf32>, vector<2x1xf32>, vector<32x1xf32> -> vector<32x1xf32>
    %cst_34 = arith.constant 0.000000e+00 : f32
    %66 = vector.broadcast %cst_34 : f32 to vector<32x1xf32>
    %67 = arith.subf %66, %65 : vector<32x1xf32>
    %68 = math.exp %67 : vector<32x1xf32>
    %cst_35 = arith.constant 1.000000e+00 : f32
    %69 = vector.broadcast %cst_35 : f32 to vector<32x1xf32>
    %70 = arith.addf %69, %68 : vector<32x1xf32>
    %cst_36 = arith.constant 1.000000e+00 : f32
    %71 = vector.broadcast %cst_36 : f32 to vector<32x1xf32>
    %72 = arith.divf %71, %70 : vector<32x1xf32>
    %73 = vector.broadcast %72 : vector<32x1xf32> to vector<32x256xf32>
    %74 = arith.mulf %73, %51 : vector<32x256xf32>
    %75 = arith.addf %74, %51 : vector<32x256xf32>
    %76 = arith.truncf %75 : vector<32x256xf32> to vector<32x256xbf16>
    %cst_37 = arith.constant dense<0.000000e+00> : vector<32x32xf32>
    %77 = tpu.matmul %76, %76, %cst_37 {dimension_numbers = #tpu.dot_dimension_numbers<[1], [1], [0], [0], [0, 0, 1, 0], [], []>} : vector<32x256xbf16>, vector<32x256xbf16>, vector<32x32xf32> -> vector<32x32xf32>
    %cst_38 = arith.constant dense<0x7F800000> : vector<32xf32>
    %78 = vector.multi_reduction <minimumf>, %77, %cst_38 [1] : vector<32x32xf32> to vector<32xf32>
    %79 = vector.shape_cast %78 : vector<32xf32> to vector<32x1xf32>
    %80 = vector.broadcast %79 : vector<32x1xf32> to vector<32x32xf32>
    %81 = arith.subf %80, %77 : vector<32x32xf32>
    %82 = math.exp %81 : vector<32x32xf32>
    %cst_39 = arith.constant dense<0.000000e+00> : vector<32xf32>
    %83 = vector.multi_reduction <add>, %82, %cst_39 [1] : vector<32x32xf32> to vector<32xf32>
    %84 = vector.shape_cast %83 : vector<32xf32> to vector<32x1xf32>
    %85 = tpu.reciprocal %84 {approx = true} : vector<32x1xf32> -> vector<32x1xf32>
    %86 = vector.broadcast %0 : f32 to vector<32x32xf32>
    %87 = arith.mulf %86, %82 : vector<32x32xf32>
    %88 = vector.broadcast %85 : vector<32x1xf32> to vector<32x32xf32>
    %89 = arith.mulf %87, %88 : vector<32x32xf32>
    %90 = arith.truncf %89 : vector<32x32xf32> to vector<32x32xbf16>
    %cst_40 = arith.constant dense<0.000000e+00> : vector<32x256xf32>
    %91 = tpu.matmul %90, %76, %cst_40 {dimension_numbers = #tpu.dot_dimension_numbers<[1], [0], [0], [1], [0, 0, 1, 1], [], []>} : vector<32x32xbf16>, vector<32x256xbf16>, vector<32x256xf32> -> vector<32x256xf32>
    %92 = arith.addf %91, %75 : vector<32x256xf32>
    %93 = arith.addf %92, %51 : vector<32x256xf32>
    %c1_41 = arith.constant 1 : index
    %c0_42 = arith.constant 0 : index
    %c0_43 = arith.constant 0 : index
    %94 = vector.load %arg5[%c1_41, %c0_42, %c0_43] : memref<2x32x256xf32, #tpu.memory_space<vmem>>, vector<1x32x256xf32>
    %95 = vector.shape_cast %94 : vector<1x32x256xf32> to vector<32x256xf32>
    %96 = vector.shape_cast %93 : vector<32x256xf32> to vector<1x32x256xf32>
    tpu.vector_store %arg5[%c1_41, %c0_42, %c0_43], %96 {strides = array<i32>} : memref<2x32x256xf32, #tpu.memory_space<vmem>>, vector<1x32x256xf32>,
    return
  }
  func.func @transform_0(%arg0: i32, %arg1: memref<1xf32, #tpu.memory_space<smem>>) -> (i32, i32, i32) {
    %c0_i32 = arith.constant 0 : i32
    %c0_i32_0 = arith.constant 0 : i32
    %c0_i32_1 = arith.constant 0 : i32
    return %arg0, %c0_i32, %c0_i32_0 : i32, i32, i32
  }
  func.func @transform_1(%arg0: i32, %arg1: memref<1xf32, #tpu.memory_space<smem>>) -> (i32, i32) {
    %c0_i32 = arith.constant 0 : i32
    %c0_i32_0 = arith.constant 0 : i32
    %c0_i32_1 = arith.constant 0 : i32
    return %c0_i32, %c0_i32_0 : i32, i32
  }
  func.func @transform_2(%arg0: i32, %arg1: memref<1xf32, #tpu.memory_space<smem>>) -> (i32, i32) {
    %c0_i32 = arith.constant 0 : i32
    %c0_i32_0 = arith.constant 0 : i32
    %c0_i32_1 = arith.constant 0 : i32
    return %c0_i32, %c0_i32_0 : i32, i32
  }
  func.func @transform_3(%arg0: i32, %arg1: memref<1xf32, #tpu.memory_space<smem>>) -> (i32, i32, i32) {
    %c0_i32 = arith.constant 0 : i32
    %c0_i32_0 = arith.constant 0 : i32
    %c0_i32_1 = arith.constant 0 : i32
    return %arg0, %c0_i32, %c0_i32_0 : i32, i32, i32
  }
}

</mosaic_0001>

<bundles_post_ra>
// kernel: tpu_custom_call.1
= control target key start
LH: loop header
LB: loop body
LE: loop exit
PB: predicated region body
PF: predicated region fallthrough
CT: control target
= control target key end

     0   :  { %10 = vsyncpa [#allocation5], 0  ;;  %s5320_s0 = inlined_call_operand.<no memory space> [shape: f32[1], index: 0, kind: input, shape index: {}]   ;;  %s5321_s1 = inlined_call_operand.hbm [shape: f32[2,32,256], index: 1, kind: input, shape index: {}]   ;;  %s5322_s2 = inlined_call_operand.vmem [shape: f32[2,32], index: 2, kind: input, shape index: {}]   ;;  %s5323_s3 = inlined_call_operand.vmem [shape: f32[32,2], index: 3, kind: input, shape index: {}]   ;;  %s5324_s4 = inlined_call_operand.hbm [shape: f32[2,32,256], index: 4, kind: output, shape index: {}]  }
   0x1   :  { %11 = vsyncpa [#allocation6], 0  ;;  %s4624_s15 = smov [#allocation4]   ;;  %s4576_s19 = scalar_lea.hbm %s5321_s1, 2048 }
   0x2   :  { %s17_s16 = sshll.u32 %s4624_s15, 4  ;;  %p4577_p0 = scmp.ne.s32.totalorder %s5321_s1, %s4576_s19  ;;  %s18_s16 = int_to_ptr.vmem [resolvable:$true] %s17_s16 }
   0x3   :  { %p4580_p1 = scmp.lt.u32.totalorder %s4576_s19, %s5321_s1 }
   0x5   :  { %p4582_p2 = pnand %p4580_p1, %p4577_p0 }
   0x7   :  { %4585 = shalt.err (!%p4582_p2)
}
   0x8   :  { %s4586_s24 = scalar_lea.vmem %s18_s16, 2048  ;;  %p4591_p4 = scmp.lt.s32.totalorder %s18_s16, %s18_s16 }
   0x9   :  { %p4587_p3 = scmp.ne.s32.totalorder %s18_s16, %s4586_s24  ;;  %p4592_p5 = scmp.lt.s32.totalorder %s4586_s24, %s4586_s24 }
   0xb   :  { %p4593_p6 = por %p4592_p5, %p4591_p4 }
   0xd   :  { %p4594_p7 = pnand %p4593_p6, %p4587_p3 }
   0xf   :  { %4597 = shalt.err (!%p4594_p7)
}
  0x10   :  { %s4625_s25 = smov 256   ;;  %s4626_s26 = smov 16  }
  0x11   :  { %23 = dma.hbm_to_vmem [thread:$0]  %s5321_s1, 2048, %s18_s16, [#allocation5], %s4625_s25, %s4625_s25, %s4626_s26  }
  0x12   :  { %4620 = dma.done.wait [#allocation5], 2048  }
  0x13   :  { %4621 = vsyncadd [#allocation5], 4294965248  ;;  %v4672_v0 = vld [vmem:[#allocation4] sm:$0xff]  ;;  %v4674_v1 = vld [vmem:[#allocation4 + $0x8] sm:$0xff]  ;;  %v5331_v16 = vmov 0.0|0.0   ;;  %vm4628_vm0 = vmmov 0  }
  0x14   :  { %v4676_v2 = vld [vmem:[#allocation4 + $0x10] sm:$0xff]  ;;  %v62_v3 = vmax.f32 %v4672_v0, %v4674_v1  ;;  %v46_v4 = vadd.f32 %v4674_v1, %v4672_v0  ;;  %v4682_v5 = vld [vmem:[#allocation4 + $0x18] sm:$0xff]  ;;  %v4692_v10 = vld [vmem:[#allocation4 + $0x20] sm:$0xff]  ;;  %4306 = vmatprep.subr.bf16.mxu1 %v5331_v16  ;;  %4270 = vmatprep.subr.bf16.mxu0 %v5331_v16  ;;  %v5327_v17 = vmov 0.0   ;;  %vm74_vm1 = vcmask 261120  }
  0x15   :  { %v65_v6 = vmax.f32 %v4676_v2, %v4682_v5  ;;  %v49_v7 = vadd.f32 %v4682_v5, %v4676_v2  ;;  %v4688_v8 = vld [vmem:[#allocation4 + $0x30] sm:$0xff]  ;;  %v4690_v9 = vld [vmem:[#allocation4 + $0x38] sm:$0xff]  ;;  %v4694_v11 = vld [vmem:[#allocation4 + $0x28] sm:$0xff]  ;;  %3918 = vmatprep.mubr.msk.f32.mxu0 %vm4628_vm0, %v5327_v17  ;;  %3984 = vmatprep.mubr.msk.f32.mxu1 %vm4628_vm0, %v5327_v17  ;;  %vm1051_vm2 = vcmask 15360   ;;  %vm1064_vm3 = vcmask 1041408  }
  0x16   :  { %63 = vmax.xlane.f32.xlu1 %v62_v3  ;;  %47 = vadd.xlane.f32.xlu0 %v46_v4  ;;  %v55_v12 = vadd.f32 %v4690_v9, %v4688_v8  ;;  %v52_v13 = vadd.f32 %v4694_v11, %v4692_v10  ;;  %v71_v14 = vmax.f32 %v4688_v8, %v4690_v9  ;;  %v33_v18 = vld [vmem:[%s5322_s2] sm:$0x3] }
  0x17   :  { %v68_v15 = vmax.f32 %v4692_v10, %v4694_v11  ;;  %v76_v19 = vsel %vm74_vm1, %v33_v18, 0 }
  0x18   :  { %v4714_v20 = vand.u32 4294901760, %v76_v19 }
  0x1a   :  { %66 = vmax.xlane.f32.xlu1 %v65_v6  ;;  %50 = vadd.xlane.f32.xlu0 %v49_v7  ;;  %v4717_v23 = vsub.f32 %v76_v19, %v4714_v20 }
  0x1c   :  { %v4720_v29 = vand.u32 4294901760, %v4717_v23 }
  0x1e   :  { %56 = vadd.xlane.f32.xlu1 %v55_v12  ;;  %53 = vadd.xlane.f32.xlu0 %v52_v13  ;;  %v150_v42 = vsub.f32 %v4717_v23, %v4720_v29 }
  0x20   :  { %v4753_v57 = vand.u32 4294901760, %v150_v42 }
  0x22   :  { %72 = vmax.xlane.f32.xlu1 %v71_v14  ;;  %69 = vmax.xlane.f32.xlu0 %v68_v15 }
  0xa3   :  { %v64_v21 = vpop.xlane.xlu1 %63  ;;  %v48_v22 = vpop.xlane.xlu0 %47 }
  0xa4   :  { %v565_v24 = vand.u32 4294901760, %v64_v21  ;;  %v58_v25 = vmul.f32 0.00390625, %v48_v22 }
  0xa6   :  { %v79_v26 = vand.u32 4294901760, %v58_v25  ;;  %v4722_v30 = vsub.f32 %v64_v21, %v565_v24 }
  0xa7   :  { %v67_v27 = vpop.xlane.xlu1 %66  ;;  %v51_v28 = vpop.xlane.xlu0 %50 }
  0xa8   :  { %v4724_v31 = vsub.f32 %v58_v25, %v79_v26  ;;  %v568_v32 = vand.u32 4294901760, %v67_v27  ;;  %v59_v33 = vmul.f32 0.00390625, %v51_v28  ;;  %v646_v40 = vand.u32 4294901760, %v4722_v30 }
  0xaa   :  { %v4726_v34 = vpack.c.bf16 %v568_v32, %v565_v24  ;;  %v4728_v35 = vsub.f32 %v67_v27, %v568_v32  ;;  %v160_v36 = vand.u32 4294901760, %v4724_v31  ;;  %v82_v37 = vand.u32 4294901760, %v59_v33 }
  0xab   :  { %v57_v38 = vpop.xlane.xlu1 %56  ;;  %v54_v39 = vpop.xlane.xlu0 %53  ;;  %v647_v54 = vsub.f32 %v4722_v30, %v646_v40 }
  0xac   :  { %v653_v41 = vand.u32 4294901760, %v4728_v35  ;;  %4308 = vmatpush3.bf16.msra.mxu1 %v4726_v34  ;;  %v4736_v43 = vsub.f32 %v59_v33, %v82_v37  ;;  %v61_v44 = vmul.f32 0.00390625, %v57_v38  ;;  %v60_v45 = vmul.f32 0.00390625, %v54_v39 }
  0xad   :  { %v4738_v46 = vpack.c.bf16 %v82_v37, %v79_v26  ;;  %4309 = vmatprep.subr.bf16.mxu1 %v5331_v16  ;;  %v161_v48 = vsub.f32 %v4724_v31, %v160_v36  ;;  %v648_v14 = vand.u32 4294901760, %v647_v54  ;;  %v4319_v42 = vpack.c.bf16 %v4728_v35, %v4722_v30 }
  0xae   :  { %v654_v47 = vsub.f32 %v4728_v35, %v653_v41  ;;  %v167_v49 = vand.u32 4294901760, %v4736_v43  ;;  %v88_v50 = vand.u32 4294901760, %v61_v44  ;;  %v85_v51 = vand.u32 4294901760, %v60_v45 }
  0xaf   :  { %4272 = vmatpush3.bf16.msra.mxu0 %v4738_v46  ;;  %v73_v52 = vpop.xlane.xlu1 %72  ;;  %v70_v53 = vpop.xlane.xlu0 %69  ;;  %v162_v6 = vand.u32 4294901760, %v161_v48  ;;  %v4283_v39 = vpack.c.bf16 %v4736_v43, %v4724_v31  ;;  %v4331_v48 = vpack.c.bf16 %v653_v41, %v646_v40 }
  0xb0   :  { %v574_v55 = vand.u32 4294901760, %v73_v52  ;;  %v571_v56 = vand.u32 4294901760, %v70_v53  ;;  %4273 = vmatprep.subr.bf16.mxu0 %v5331_v16  ;;  %v168_v58 = vsub.f32 %v4736_v43, %v167_v49  ;;  %v4758_v59 = vsub.f32 %v61_v44, %v88_v50 }
  0xb1   :  { %v4760_v60 = vsub.f32 %v60_v45, %v85_v51  ;;  %v4762_v61 = vpack.c.bf16 %v88_v50, %v85_v51  ;;  %v655_v62 = vand.u32 4294901760, %v654_v47  ;;  %v4295_v47 = vpack.c.bf16 %v167_v49, %v160_v36  ;;  %v35_v49 = vld [vmem:[%s5323_s3 + $0x8] sm:$0xff]  ;;  %v36_v50 = vld [vmem:[%s5323_s3 + $0x10] sm:$0xff] }
  0xb2   :  { %v4764_v63 = vsub.f32 %v73_v52, %v574_v55  ;;  %v4766_v3 = vpack.c.bf16 %v574_v55, %v571_v56  ;;  %v4768_v4 = vsub.f32 %v70_v53, %v571_v56  ;;  %v169_v7 = vand.u32 4294901760, %v168_v58  ;;  %v37_v53 = vld [vmem:[%s5323_s3 + $0x18] sm:$0xff] }
  0xb3   :  { %v181_v12 = vand.u32 4294901760, %v4758_v59  ;;  %v174_v13 = vand.u32 4294901760, %v4760_v60  ;;  %4275 = vmatpush3.bf16.msra.mxu0 %v4762_v61  ;;  %v4313_v26 = vpack.c.bf16 %v655_v62, %v648_v14  ;;  %v4286_v44 = vpack.c.bf16 %v4758_v59, %v4760_v60 }
  0xb4   :  { %v667_v15 = vand.u32 4294901760, %v4764_v63  ;;  %v660_v18 = vand.u32 4294901760, %v4768_v4  ;;  %4311 = vmatpush3.bf16.msra.mxu1 %v4766_v3  ;;  %4276 = vmatprep.subr.bf16.mxu0 %v5331_v16  ;;  %v4277_v22 = vpack.c.bf16 %v169_v7, %v162_v6  ;;  %v4322_v45 = vpack.c.bf16 %v4764_v63, %v4768_v4 }
  0xb5   :  { %v182_v19 = vsub.f32 %v4758_v59, %v181_v12  ;;  %v175_v21 = vsub.f32 %v4760_v60, %v174_v13  ;;  %4312 = vmatprep.subr.bf16.mxu1 %v5331_v16  ;;  %v4298_v31 = vpack.c.bf16 %v181_v12, %v174_v13  ;;  %v1056_v51 = vsel %vm1051_vm2, %v35_v49, 0 }
  0xb6   :  { %v668_v24 = vsub.f32 %v4764_v63, %v667_v15  ;;  %v661_v25 = vsub.f32 %v4768_v4, %v660_v18  ;;  %3919 = vmatmul.mubr.f32.vlgmr.msra.gmra.mrb[0].mxu0 %v4753_v57  ;;  %v4334_v30 = vpack.c.bf16 %v667_v15, %v660_v18  ;;  %v1059_v52 = vsel %vm1051_vm2, %v36_v50, 0 }
  0xb7   :  { %v183_v27 = vand.u32 4294901760, %v182_v19  ;;  %v176_v28 = vand.u32 4294901760, %v175_v21  ;;  %4278 = vmatpush3.bf16.msra.mxu0 %v4277_v22  ;;  %3985 = vmatmul.mubr.f32.vlgmr.msra.gmra.mrb[0].mxu1 %v4753_v57  ;;  %v4897_v54 = vand.u32 4294901760, %v1056_v51  ;;  %v4899_v55 = vand.u32 4294901760, %v1059_v52 }
  0xb8   :  { %v669_v32 = vand.u32 4294901760, %v668_v24  ;;  %v662_v33 = vand.u32 4294901760, %v661_v25  ;;  %4314 = vmatpush3.bf16.msra.mxu1 %v4313_v26  ;;  %4279 = vmatprep.subr.bf16.mxu0 %v5331_v16  ;;  %v1062_v56 = vsel %vm1051_vm2, %v37_v53, 0 }
  0xb9   :  { %v4280_v37 = vpack.c.bf16 %v183_v27, %v176_v28  ;;  %4315 = vmatprep.subr.bf16.mxu1 %v5331_v16  ;;  %3929 = vmatprep.mubr.msk.f32.mxu0 %vm4628_vm0, %v5327_v17  ;;  %v4902_v58 = vsub.f32 %v1056_v51, %v4897_v54  ;;  %v4904_v59 = vand.u32 4294901760, %v1062_v56  ;;  %v4907_v60 = vsub.f32 %v1059_v52, %v4899_v55 }
  0xba   :  { %v4316_v38 = vpack.c.bf16 %v669_v32, %v662_v33  ;;  %3995 = vmatprep.mubr.msk.f32.mxu1 %vm4628_vm0, %v5327_v17 }
  0xbb   :  { %4281 = vmatpush3.bf16.msra.mxu0 %v4280_v37  ;;  %v4913_v62 = vsub.f32 %v1062_v56, %v4904_v59 }
  0xbc   :  { %4317 = vmatpush3.bf16.msra.mxu1 %v4316_v38  ;;  %4282 = vmatprep.subr.bf16.mxu0 %v5331_v16  ;;  %v5325_v38 = vmov 0  }
  0xbd   :  { %4318 = vmatprep.subr.bf16.mxu1 %v5331_v16  ;;  %v4921_v15 = vand.u32 4294901760, %v4913_v62  ;;  %4503 = vset.pattern.permute.xlu1 %v5325_v38 }
  0xbe   :  { %3930 = vmatmul.mubr.f32.vlgmr.msra.gmra.mrb[0].mxu0 %v4714_v20  ;;  %4502 = vset.pattern.permute.xlu0 %v5325_v38 }
  0xbf   :  { %4284 = vmatpush3.bf16.msra.mxu0 %v4283_v39  ;;  %3996 = vmatmul.mubr.f32.vlgmr.msra.gmra.mrb[0].mxu1 %v4714_v20  ;;  %v1167_v25 = vsub.f32 %v4913_v62, %v4921_v15 }
  0xc0   :  { %4320 = vmatpush3.bf16.msra.mxu1 %v4319_v42  ;;  %4285 = vmatprep.subr.bf16.mxu0 %v5331_v16 }
  0xc1   :  { %4321 = vmatprep.subr.bf16.mxu1 %v5331_v16  ;;  %3940 = vmatprep.mubr.msk.f32.mxu0 %vm4628_vm0, %v5327_v17  ;;  %v4933_v28 = vand.u32 4294901760, %v1167_v25 }
  0xc2   :  { %4006 = vmatprep.mubr.msk.f32.mxu1 %vm4628_vm0, %v5327_v17 }
  0xc3   :  { %4287 = vmatpush3.bf16.msra.mxu0 %v4286_v44 }
  0xc4   :  { %4323 = vmatpush3.bf16.msra.mxu1 %v4322_v45  ;;  %4288 = vmatprep.subr.bf16.mxu0 %v5331_v16 }
  0xc5   :  { %4324 = vmatprep.subr.bf16.mxu1 %v5331_v16 }
  0xc6   :  { %3941 = vmatmul.mubr.f32.vlgmr.msra.gmra.mrb[0].mxu0 %v4717_v23 }
  0xc7   :  { %4290 = vmatpush3.bf16.msra.mxu0 %v4738_v46  ;;  %4007 = vmatmul.mubr.f32.vlgmr.msra.gmra.mrb[0].mxu1 %v4717_v23 }
  0xc8   :  { %4326 = vmatpush3.bf16.msra.mxu1 %v4726_v34  ;;  %4291 = vmatprep.subr.bf16.mxu0 %v5331_v16 }
  0xc9   :  { %4327 = vmatprep.subr.bf16.mxu1 %v5331_v16  ;;  %3951 = vmatprep.mubr.msk.f32.mxu0 %vm4628_vm0, %v5327_v17 }
  0xca   :  { %4017 = vmatprep.mubr.msk.f32.mxu1 %vm4628_vm0, %v5327_v17 }
  0xcb   :  { %4293 = vmatpush3.bf16.msra.mxu0 %v4762_v61 }
  0xcc   :  { %4329 = vmatpush3.bf16.msra.mxu1 %v4766_v3  ;;  %4294 = vmatprep.subr.bf16.mxu0 %v5331_v16 }
  0xcd   :  { %4330 = vmatprep.subr.bf16.mxu1 %v5331_v16 }
  0xce   :  { %3952 = vmatmul.mubr.f32.vlgmr.msra.gmra.mrb[0].mxu0 %v4720_v29 }
  0xcf   :  { %4296 = vmatpush3.bf16.msra.mxu0 %v4295_v47  ;;  %4018 = vmatmul.mubr.f32.vlgmr.msra.gmra.mrb[0].mxu1 %v4720_v29 }
  0xd0   :  { %4332 = vmatpush3.bf16.msra.mxu1 %v4331_v48  ;;  %4297 = vmatprep.subr.bf16.mxu0 %v5331_v16 }
  0xd1   :  { %4333 = vmatprep.subr.bf16.mxu1 %v5331_v16  ;;  %3962 = vmatprep.mubr.msk.f32.mxu0 %vm4628_vm0, %v5327_v17 }
  0xd2   :  { %4028 = vmatprep.mubr.msk.f32.mxu1 %vm4628_vm0, %v5327_v17 }
  0xd3   :  { %4299 = vmatpush3.bf16.msra.mxu0 %v4298_v31 }
  0xd4   :  { %4335 = vmatpush3.bf16.msra.mxu1 %v4334_v30  ;;  %4300 = vmatprep.subr.bf16.mxu0 %v5331_v16 }
  0xd5   :  { %4336 = vmatprep.subr.bf16.mxu1 %v5331_v16 }
  0xd6   :  { %3963 = vmatmul.mubr.f32.vlgmr.msra.gmra.mrb[0].mxu0 %v4714_v20 }
  0xd7   :  { %4302 = vmatpush3.bf16.msra.mxu0 %v4738_v46  ;;  %4029 = vmatmul.mubr.f32.vlgmr.msra.gmra.mrb[0].mxu1 %v4714_v20 }
  0xd8   :  { %4338 = vmatpush3.bf16.msra.mxu1 %v4726_v34  ;;  %4303 = vmatprep.subr.bf16.mxu0 %v5331_v16  ;;  %v34_v34 = vld [vmem:[%s5323_s3] sm:$0xff] }
  0xd9   :  { %4339 = vmatprep.subr.bf16.mxu1 %v5331_v16  ;;  %3973 = vmatprep.mubr.msk.f32.mxu0 %vm4628_vm0, %v5327_v17  ;;  %v1053_v35 = vsel %vm1051_vm2, %v34_v34, 0 }
  0xda   :  { %4039 = vmatprep.mubr.msk.f32.mxu1 %vm4628_vm0, %v5327_v17  ;;  %v4875_v36 = vand.u32 4294901760, %v1053_v35 }
  0xdb   :  { %4305 = vmatpush3.bf16.msra.mxu0 %v4762_v61  ;;  %v4910_v61 = vand.u32 4294901760, %v4902_v58 }
  0xdc   :  { %4341 = vmatpush3.bf16.msra.mxu1 %v4766_v3  ;;  %v4878_v40 = vsub.f32 %v1053_v35, %v4875_v36  ;;  %v4916_v3 = vand.u32 4294901760, %v4907_v60 }
  0xdd   :  { %v1147_v14 = vsub.f32 %v4902_v58, %v4910_v61 }
  0xde   :  { %3974 = vmatmul.mubr.f32.vlgmr.msra.gmra.mrb[0].mxu0 %v4714_v20  ;;  %v4881_v41 = vand.u32 4294901760, %v4878_v40  ;;  %v1157_v19 = vsub.f32 %v4907_v60, %v4916_v3 }
  0xdf   :  { %4040 = vmatmul.mubr.f32.vlgmr.msra.gmra.mrb[0].mxu1 %v4714_v20  ;;  %v4926_v24 = vand.u32 4294901760, %v1147_v14 }
  0xe0   :  { %v1137_v43 = vsub.f32 %v4878_v40, %v4881_v41  ;;  %v4930_v26 = vand.u32 4294901760, %v1157_v19 }
  0xe2   :  { %v4885_v46 = vand.u32 4294901760, %v1137_v43 }
  0xe4   :  { %4044 = vmatprep.mubr.f32.mxu0 %v4885_v46 }
 0x1b1   :  { %v559_v63 = vpop.f32.mrb[0].mxu0 }
 0x1b2   :  { %v3975_v4 = vpop.f32.mrb[1].mxu0  ;;  %v1045_v6 = vpop.f32.mrb[0].mxu1  ;;  %v563_v7 = vmax.f32 %v559_v63, 0.0 }
 0x1b3   :  { %v1049_v12 = vmax.f32 %v1045_v6, 0.0  ;;  %v4041_v13 = vpop.f32.mrb[1].mxu1 }
 0x1b5   :  { %v1050_v18 = vadd.f32 %v1049_v12, %v563_v7 }
 0x1b7   :  { %v1066_v21 = vsel %vm1064_vm3, %v1050_v18, 0 }
 0x1b8   :  { %v1069_v22 = vand.u32 4294901760, %v1066_v21 }
 0x1ba   :  { %v1176_v27 = vsub.f32 %v1066_v21, %v1069_v22  ;;  %4042 = vmatprep.subr.mxu0 %v1069_v22 }
 0x1bb   :  { %4043 = vmatpush3.msra.mxu0 %v1069_v22 }
 0x1bc   :  { %4045 = vmatmul.mubr.f32.vlgmr.msra.gmra.mrb[2].mxu0 %v4926_v24  ;;  %v1177_v32 = vand.u32 4294901760, %v1176_v27 }
 0x1bd   :  { %4047 = vmatprep.mubr.f32.mxu0 %v4930_v26 }
 0x1be   :  { %v1178_v33 = vsub.f32 %v1176_v27, %v1177_v32 }
 0x1c0   :  { %4048 = vmatmul.mubr.f32.gmra.mrb[4].mxu0 %v4933_v28  ;;  %v1179_v37 = vand.u32 4294901760, %v1178_v33 }
 0x1c1   :  { %4052 = vmatprep.mubr.f32.mxu0 %v4875_v36 }
 0x1c2   :  { %4050 = vmatprep.subr.mxu0 %v1179_v37 }
 0x1c3   :  { %4051 = vmatpush3.msra.mxu0 %v1179_v37 }
 0x1c4   :  { %4053 = vmatmul.mubr.f32.vlgmr.msra.gmra.mrb[2].mxu0 %v4897_v54  ;;  %4058 = vmatprep.subr.mxu0 %v1176_v27 }
 0x1c5   :  { %4059 = vmatpush3.msra.mxu0 %v1176_v27  ;;  %4055 = vmatprep.mubr.f32.mxu0 %v4899_v55 }
 0x1c6   :  { %4066 = vmatprep.subr.mxu0 %v1069_v22 }
 0x1c8   :  { %4056 = vmatmul.mubr.f32.gmra.mrb[4].mxu0 %v4904_v59 }
 0x1c9   :  { %4060 = vmatprep.mubr.f32.mxu0 %v4878_v40 }
 0x1cc   :  { %4061 = vmatmul.mubr.f32.vlgmr.msra.gmra.mrb[2].mxu0 %v4902_v58 }
 0x1cd   :  { %4067 = vmatpush3.msra.mxu0 %v1069_v22  ;;  %4063 = vmatprep.mubr.f32.mxu0 %v4907_v60 }
 0x1ce   :  { %4074 = vmatprep.subr.mxu0 %v1177_v32 }
 0x1d0   :  { %4064 = vmatmul.mubr.f32.gmra.mrb[4].mxu0 %v4913_v62 }
 0x1d1   :  { %4068 = vmatprep.mubr.f32.mxu0 %v4881_v41 }
 0x1d4   :  { %4069 = vmatmul.mubr.f32.vlgmr.msra.gmra.mrb[2].mxu0 %v4910_v61 }
 0x1d5   :  { %4075 = vmatpush3.msra.mxu0 %v1177_v32  ;;  %4071 = vmatprep.mubr.f32.mxu0 %v4916_v3 }
 0x1d6   :  { %4082 = vmatprep.subr.mxu0 %v1069_v22 }
 0x1d8   :  { %4072 = vmatmul.mubr.f32.gmra.mrb[4].mxu0 %v4921_v15 }
 0x1d9   :  { %4076 = vmatprep.mubr.f32.mxu0 %v4875_v36 }
 0x1dc   :  { %4077 = vmatmul.mubr.f32.vlgmr.msra.gmra.mrb[2].mxu0 %v4897_v54 }
 0x1dd   :  { %4083 = vmatpush3.msra.mxu0 %v1069_v22  ;;  %4079 = vmatprep.mubr.f32.mxu0 %v4899_v55 }
 0x1de   :  { %4378 = vmatprep.subr.bf16.mxu0 %v5331_v16 }
 0x1e0   :  { %4080 = vmatmul.mubr.f32.gmra.mrb[4].mxu0 %v4904_v59 }
 0x1e1   :  { %4084 = vmatprep.mubr.f32.mxu0 %v4875_v36 }
 0x1e4   :  { %4085 = vmatmul.mubr.f32.vlgmr.msra.gmra.mrb[2].mxu0 %v4897_v54 }
 0x1e5   :  { %4087 = vmatprep.mubr.f32.mxu0 %v4899_v55 }
 0x1e8   :  { %4088 = vmatmul.mubr.f32.gmra.mrb[4].mxu0 %v4904_v59 }
 0x1e9   :  { %4164 = vmatprep.mubr.msk.f32.mxu0 %vm4628_vm0, %v5327_v17 }
 0x2b7   :  { %v4086_v39 = vpop.f32.mrb[2].mxu0 }
 0x2b8   :  { %v1644_v42 = vsub.f32 0.0, %v4086_v39  ;;  %v1621_v44 = vpop.f32.mrb[3].mxu0 }
 0x2b9   :  { %v1643_v45 = vsub.f32 0.0, %v1621_v44 }
 0x2ba   :  { %v1649_v47 = vmul.f32 1.442695, %v1644_v42 }
 0x2bb   :  { %v1647_v48 = vmul.f32 1.442695, %v1643_v45  ;;  %v4089_v31 = vpop.f32.mrb[4].mxu0 }
 0x2bc   :  { %4504 = vpow2.f32 %v1649_v47  ;;  %v1646_v30 = vsub.f32 0.0, %v4089_v31  ;;  %v1633_v34 = vpop.f32.mrb[5].mxu0 }
 0x2bd   :  { %4506 = vpow2.f32 %v1647_v48  ;;  %v1645_v35 = vsub.f32 0.0, %v1633_v34 }
 0x2be   :  { %v1653_v43 = vmul.f32 1.442695, %v1646_v30 }
 0x2bf   :  { %v1651_v49 = vmul.f32 1.442695, %v1645_v35 }
 0x2c0   :  { %4508 = vpow2.f32 %v1653_v43 }
 0x2c1   :  { %4510 = vpow2.f32 %v1651_v49 }
 0x2c6   :  { %v4505_v50 = vpop.eup %4504 }
 0x2c7   :  { %v4507_v51 = vpop.eup %4506  ;;  %v1656_v52 = vadd.f32 1.0, %v4505_v50 }
 0x2c8   :  { %v1655_v53 = vadd.f32 1.0, %v4507_v51 }
 0x2c9   :  { %4512 = vrcp.f32 %v1656_v52 }
 0x2ca   :  { %v4509_v56 = vpop.eup %4508  ;;  %4514 = vrcp.f32 %v1655_v53 }
 0x2cb   :  { %v4511_v63 = vpop.eup %4510  ;;  %v1658_v6 = vadd.f32 1.0, %v4509_v56 }
 0x2cc   :  { %v1657_v4 = vadd.f32 1.0, %v4511_v63 }
 0x2ce   :  { %4516 = vrcp.f32 %v1657_v4 }
 0x2cf   :  { %4518 = vrcp.f32 %v1658_v6 }
 0x2d3   :  { %v4513_v7 = vpop.eup %4512 }
 0x2d4   :  { %v4515_v12 = vpop.eup %4514  ;;  %1674 = vperm.xlu1 %4503, %v4513_v7  }
 0x2d5   :  { %1669 = vperm.xlu0 %4502, %v4515_v12  }
 0x2d8   :  { %v4517_v13 = vpop.eup %4516 }
 0x2d9   :  { %1679 = vperm.xlu1 %4503, %v4517_v13   ;;  %v4519_v14 = vpop.eup %4518 }
 0x2dd   :  { %1684 = vperm.xlu1 %4503, %v4519_v14  }
 0x353   :  { %v1675_v18 = vpop.permute.xlu1 %1674 }
 0x354   :  { %v1689_v19 = vmul.f32 %v1675_v18, %v4676_v2  ;;  %v1690_v21 = vmul.f32 %v1675_v18, %v4682_v5  ;;  %v1670_v22 = vpop.permute.xlu0 %1669 }
 0x355   :  { %v1687_v25 = vmul.f32 %v1670_v22, %v4672_v0  ;;  %v1688_v27 = vmul.f32 %v1670_v22, %v4674_v1 }
 0x356   :  { %v4967_v32 = vadd.f32 %v1689_v19, %v4676_v2  ;;  %v4970_v33 = vadd.f32 %v1690_v21, %v4682_v5 }
 0x357   :  { %v4973_v37 = vadd.f32 %v1687_v25, %v4672_v0  ;;  %v4976_v39 = vadd.f32 %v1688_v27, %v4674_v1 }
 0x358   :  { %v1680_v42 = vpop.permute.xlu1 %1679 }
 0x359   :  { %v1703_v44 = vpack.c.bf16 %v4967_v32, %v4973_v37  ;;  %v1704_v45 = vpack.c.bf16 %v4970_v33, %v4976_v39  ;;  %v1691_v47 = vmul.f32 %v1680_v42, %v4692_v10  ;;  %v1692_v2 = vmul.f32 %v1680_v42, %v4694_v11 }
 0x35b   :  { %1707 = vmatprep.subr.bf16.mxu1 %v1704_v45  ;;  %1739 = vmatprep.mubr.bf16.mxu1 %v1704_v45  ;;  %v4987_v48 = vadd.f32 %v1691_v47, %v4692_v10  ;;  %v4990_v31 = vadd.f32 %v1692_v2, %v4694_v11 }
 0x35c   :  { %1708 = vmatpush1.bf16.xpose.msra.mxu1 %v1703_v44  ;;  %v1685_v5 = vpop.permute.xlu1 %1684 }
 0x35d   :  { %v1693_v0 = vmul.f32 %v1685_v5, %v4688_v8  ;;  %v1694_v1 = vmul.f32 %v1685_v5, %v4690_v9  ;;  %v5010_v5 = vld [vmem:[#allocation4 + $0x40] sm:$0xff] }
 0x35f   :  { %v4993_v30 = vadd.f32 %v1693_v0, %v4688_v8  ;;  %v4996_v34 = vadd.f32 %v1694_v1, %v4690_v9  ;;  %v5012_v0 = vld [vmem:[#allocation4 + $0x48] sm:$0xff] }
 0x361   :  { %v1705_v35 = vpack.c.bf16 %v4993_v30, %v4987_v48  ;;  %v1706_v43 = vpack.c.bf16 %v4996_v34, %v4990_v31 }
 0x363   :  { %1709 = vmatprep.subr.bf16.mxu1 %v1706_v43 }
 0x364   :  { %1710 = vmatpush1.bf16.xpose.msra.mxu1 %v1705_v35 }
 0x365   :  { %1813 = vmatprep.subr.bf16.mxu1 %v1704_v45 }
 0x36b   :  { %1740 = vmatmul.mubr.bf16.vlgmr.msra.gmra.mrb[4].mxu1 %v1703_v44 }
 0x36c   :  { %1747 = vmatprep.mubr.bf16.mxu1 %v1706_v43  ;;  %1814 = vmatpush1.bf16.msra.mxu1 %v1703_v44 }
 0x36d   :  { %1815 = vmatprep.subr.bf16.mxu1 %v1706_v43  ;;  %v1891_v43 = vadd.f32 %v5012_v0, %v5010_v5 }
 0x370   :  { %1816 = vmatpush1.bf16.msra.mxu1 %v1705_v35 }
 0x371   :  { %4342 = vmatprep.subr.bf16.mxu1 %v5331_v16 }
 0x373   :  { %1748 = vmatmul.mubr.bf16.gmra.mrb[8].mxu1 %v1705_v35 }
 0x374   :  { %1845 = vmatprep.mubr.bf16.mxu1 %v5325_v38 }
 0x43e   :  { %v1741_v8 = vpop.f32.mrb[4].mxu1 }
 0x43f   :  { %v1743_v9 = vpop.f32.mrb[5].mxu1  ;;  %v1756_v10 = vsel %vm74_vm1, %v1741_v8, inf }
 0x440   :  { %1757 = vmin.xlane.f32.xlu1 %v1756_v10  ;;  %v1744_v11 = vpop.f32.mrb[6].mxu1  ;;  %v5019_v9 = vld [vmem:[#allocation4 + $0x58] sm:$0xff] }
 0x441   :  { %v1746_v49 = vpop.f32.mrb[7].mxu1  ;;  %v1759_v50 = vsel %vm74_vm1, %v1744_v11, inf }
 0x442   :  { %1760 = vmin.xlane.f32.xlu0 %v1759_v50  ;;  %v1907_v49 = vmax.f32 %v5010_v5, %v5012_v0 }
 0x446   :  { %v1749_v51 = vpop.f32.mrb[8].mxu1 }
 0x447   :  { %v1751_v52 = vpop.f32.mrb[9].mxu1  ;;  %v1762_v53 = vsel %vm74_vm1, %v1749_v51, inf }
 0x448   :  { %1763 = vmin.xlane.f32.xlu1 %v1762_v53  ;;  %v1752_v56 = vpop.f32.mrb[10].mxu1  ;;  %v5028_v52 = vld [vmem:[#allocation4 + $0x68] sm:$0xff] }
 0x449   :  { %v1754_v63 = vpop.f32.mrb[11].mxu1  ;;  %v1765_v4 = vsel %vm74_vm1, %v1752_v56, inf  ;;  %5346 = vst [vmem:[#allocation11_spill] sm:$0xff] %v5028_v52 }
 0x44a   :  { %v5034_v63 = vld [vmem:[#allocation4 + $0x70] sm:$0xff] }
 0x44b   :  { %5347 = vst [vmem:[#allocation12_spill] sm:$0xff] %v5034_v63 }
 0x44c   :  { %1766 = vmin.xlane.f32.xlu1 %v1765_v4  ;;  %v5036_v4 = vld [vmem:[#allocation4 + $0x78] sm:$0xff] }
 0x4cd   :  { %v1758_v6 = vpop.xlane.xlu1 %1757 }
 0x4ce   :  { %v1768_v7 = vsub.f32 %v1758_v6, %v1741_v8  ;;  %v5017_v8 = vld [vmem:[#allocation4 + $0x50] sm:$0xff] }
 0x4cf   :  { %v1761_v12 = vpop.xlane.xlu0 %1760  ;;  %v1894_v50 = vadd.f32 %v5019_v9, %v5017_v8 }
 0x4d0   :  { %v1772_v13 = vmul.f32 1.442695, %v1768_v7  ;;  %v1769_v14 = vsub.f32 %v1761_v12, %v1744_v11  ;;  %v1900_v7 = vadd.f32 %v5036_v4, %v5034_v63  ;;  %v1916_v12 = vmax.f32 %v5034_v63, %v5036_v4 }
 0x4d2   :  { %4520 = vpow2.f32 %v1772_v13  ;;  %v1774_v18 = vmul.f32 1.442695, %v1769_v14 }
 0x4d4   :  { %4522 = vpow2.f32 %v1774_v18 }
 0x4d5   :  { %v1764_v19 = vpop.xlane.xlu1 %1763 }
 0x4d6   :  { %v1770_v21 = vsub.f32 %v1764_v19, %v1749_v51  ;;  %v5026_v51 = vld [vmem:[#allocation4 + $0x60] sm:$0xff]  ;;  %v5047_v19 = vstv %s5320_s0  ;;  %s4631_s0 = smov [#allocation7]  }
 0x4d7   :  { %5345 = vst [vmem:[#allocation10_spill] sm:$0xff] %v5026_v51  ;;  %v1897_v53 = vadd.f32 %v5028_v52, %v5026_v51  ;;  %v1913_v6 = vmax.f32 %v5026_v51, %v5028_v52  ;;  %5348 = vst [vmem:[#allocation13_spill] sm:$0xff] %v5047_v19  ;;  %s3714_s12 = sshll.u32 %s4631_s0, 4  ;;  %s3715_s12 = int_to_ptr.vmem [resolvable:$true] %s3714_s12 }
 0x4d8   :  { %v1776_v22 = vmul.f32 1.442695, %v1770_v21  ;;  %s4598_s13 = scalar_lea.vmem %s3715_s12, 2048  ;;  %p4603_p9 = scmp.lt.s32.totalorder %s3715_s12, %s3715_s12 }
 0x4d9   :  { %v1767_v25 = vpop.xlane.xlu1 %1766  ;;  %p4599_p8 = scmp.ne.s32.totalorder %s3715_s12, %s4598_s13  ;;  %p4604_p10 = scmp.lt.s32.totalorder %s4598_s13, %s4598_s13 }
 0x4da   :  { %4524 = vpow2.f32 %v1776_v22  ;;  %v1771_v27 = vsub.f32 %v1767_v25, %v1752_v56  ;;  %v1910_v56 = vmax.f32 %v5017_v8, %v5019_v9 }
 0x4db   :  { %p4605_p11 = por %p4604_p10, %p4603_p9 }
 0x4dc   :  { %v4521_v42 = vpop.eup %4520  ;;  %v1778_v44 = vmul.f32 1.442695, %v1771_v27 }
 0x4dd   :  { %v1780_v45 = vsel %vm74_vm1, %v4521_v42, 0.0  ;;  %p4606_p12 = pnand %p4605_p11, %p4599_p8 }
 0x4de   :  { %v4523_v47 = vpop.eup %4522  ;;  %4526 = vpow2.f32 %v1778_v44  ;;  %1781 = vadd.xlane.f32.xlu1 %v1780_v45  ;;  %v1797_v44 = vmul.f32 %v4521_v42, %v5047_v19 }
 0x4df   :  { %v1783_v2 = vsel %vm74_vm1, %v4523_v47, 0.0  ;;  %v1798_v45 = vmul.f32 %v4523_v47, %v5047_v19 }
 0x4e2   :  { %1784 = vadd.xlane.f32.xlu1 %v1783_v2 }
 0x4e4   :  { %v4525_v1 = vpop.eup %4524 }
 0x4e5   :  { %v1786_v35 = vsel %vm74_vm1, %v4525_v1, 0.0 }
 0x4e6   :  { %1787 = vadd.xlane.f32.xlu0 %v1786_v35 }
 0x4e8   :  { %v4527_v10 = vpop.eup %4526 }
 0x4e9   :  { %v1789_v11 = vsel %vm74_vm1, %v4527_v10, 0.0 }
 0x4ea   :  { %1892 = vadd.xlane.f32.xlu0 %v1891_v43  ;;  %1790 = vadd.xlane.f32.xlu1 %v1789_v11 }
 0x4ee   :  { %1908 = vmax.xlane.f32.xlu0 %v1907_v49  ;;  %1895 = vadd.xlane.f32.xlu1 %v1894_v50 }
 0x4f2   :  { %1898 = vadd.xlane.f32.xlu0 %v1897_v53  ;;  %1911 = vmax.xlane.f32.xlu1 %v1910_v56 }
 0x4f6   :  { %1914 = vmax.xlane.f32.xlu0 %v1913_v6  ;;  %1901 = vadd.xlane.f32.xlu1 %v1900_v7 }
 0x4fa   :  { %1917 = vmax.xlane.f32.xlu1 %v1916_v12 }
 0x56b   :  { %v1782_v13 = vpop.xlane.xlu1 %1781 }
 0x56c   :  { %4528 = vrcp.f32 %v1782_v13 }
 0x56f   :  { %v1785_v14 = vpop.xlane.xlu1 %1784 }
 0x570   :  { %4530 = vrcp.f32 %v1785_v14 }
 0x573   :  { %v1788_v18 = vpop.xlane.xlu0 %1787 }
 0x574   :  { %4532 = vrcp.f32 %v1788_v18 }
 0x576   :  { %v4529_v25 = vpop.eup %4528 }
 0x577   :  { %v1893_v21 = vpop.xlane.xlu0 %1892  ;;  %v1791_v22 = vpop.xlane.xlu1 %1790  ;;  %v1801_v43 = vmul.f32 %v4529_v25, %v1797_v44 }
 0x578   :  { %v1903_v27 = vmul.f32 0.00390625, %v1893_v21  ;;  %4534 = vrcp.f32 %v1791_v22  ;;  %v1799_v22 = vmul.f32 %v4525_v1, %v5047_v19 }
 0x57a   :  { %v4531_v2 = vpop.eup %4530  ;;  %v1920_v35 = vand.u32 4294901760, %v1903_v27 }
 0x57b   :  { %v1802_v11 = vmul.f32 %v4531_v2, %v1798_v45  ;;  %v1909_v49 = vpop.xlane.xlu0 %1908  ;;  %v1896_v50 = vpop.xlane.xlu1 %1895 }
 0x57c   :  { %v2406_v53 = vand.u32 4294901760, %v1909_v49  ;;  %v1904_v56 = vmul.f32 0.00390625, %v1896_v50  ;;  %v5051_v7 = vsub.f32 %v1903_v27, %v1920_v35  ;;  %v1800_v27 = vmul.f32 %v4527_v10, %v5047_v19 }
 0x57d   :  { %v1805_v6 = vpack.c.bf16 %v1802_v11, %v1801_v43 }
 0x57e   :  { %v1923_v12 = vand.u32 4294901760, %v1904_v56  ;;  %v4533_v13 = vpop.eup %4532  ;;  %v5054_v42 = vsub.f32 %v1909_v49, %v2406_v53  ;;  %v5330_v2 = vand.u32 4294901760, %v5051_v7 }
 0x57f   :  { %v1899_v14 = vpop.xlane.xlu0 %1898  ;;  %3726 = vmatmul.mubr.msk.bf16.vlgmr.msra.gmra.mrb[12].mxu1 %vm74_vm1, %v1805_v6  ;;  %v1912_v18 = vpop.xlane.xlu1 %1911  ;;  %v1803_v11 = vmul.f32 %v4533_v13, %v1799_v22 }
 0x580   :  { %v5056_v47 = vpack.c.bf16 %v1923_v12, %v1920_v35  ;;  %v5058_v21 = vsub.f32 %v1904_v56, %v1923_v12  ;;  %1855 = vmatprep.mubr.bf16.mxu1 %v5325_v38  ;;  %v1905_v25 = vmul.f32 0.00390625, %v1899_v14  ;;  %v2409_v44 = vand.u32 4294901760, %v1912_v18 }
 0x581   :  { %v5338_v10 = vand.u32 4294901760, %v5054_v42 }
 0x582   :  { %v4535_v45 = vpop.eup %4534  ;;  %v5329_v43 = vand.u32 4294901760, %v5058_v21  ;;  %4344 = vmatpush3.bf16.msra.mxu1 %v5056_v47  ;;  %v1926_v35 = vand.u32 4294901760, %v1905_v25  ;;  %v5066_v49 = vpack.c.bf16 %v2409_v44, %v2406_v53  ;;  %v5068_v50 = vsub.f32 %v1912_v18, %v2409_v44 }
 0x583   :  { %v1915_v56 = vpop.xlane.xlu0 %1914  ;;  %v1902_v6 = vpop.xlane.xlu1 %1901  ;;  %v1804_v1 = vmul.f32 %v4535_v45, %v1800_v27  ;;  %4345 = vmatprep.subr.bf16.mxu1 %v5331_v16  ;;  %v2002_v44 = vsub.f32 %v5051_v7, %v5330_v2 }
 0x584   :  { %v2412_v12 = vand.u32 4294901760, %v1915_v56  ;;  %v1906_v14 = vmul.f32 0.00390625, %v1902_v6  ;;  %v2009_v38 = vsub.f32 %v5058_v21, %v5329_v43  ;;  %v5075_v17 = vsub.f32 %v1905_v25, %v1926_v35  ;;  %4380 = vmatpush3.bf16.msra.mxu0 %v5066_v49 }
 0x585   :  { %v5333_v53 = vand.u32 4294901760, %v5068_v50  ;;  %v1806_v13 = vpack.c.bf16 %v1804_v1, %v1803_v11  ;;  %4381 = vmatprep.subr.bf16.mxu0 %v5331_v16  ;;  %v2488_v11 = vsub.f32 %v5054_v42, %v5338_v10  ;;  %v5349_v43 = vmov 0.0  }
 0x586   :  { %v5079_v18 = vsub.f32 %v1915_v56, %v2412_v12  ;;  %v1929_v22 = vand.u32 4294901760, %v1906_v14  ;;  %v5339_v27 = vand.u32 4294901760, %v5075_v17  ;;  %v2010_v2 = vand.u32 4294901760, %v2009_v38 }
 0x587   :  { %v2495_v25 = vsub.f32 %v5068_v50, %v5333_v53  ;;  %3727 = vmatmul.mubr.msk.bf16.gmra.mrb[16].mxu1 %vm74_vm1, %v1806_v13  ;;  %v1918_v45 = vpop.xlane.xlu1 %1917  ;;  %v2489_v10 = vand.u32 4294901760, %v2488_v11 }
 0x588   :  { %v5093_v56 = vpack.c.bf16 %v1929_v22, %v1926_v35  ;;  %v5095_v6 = vsub.f32 %v1906_v14, %v1929_v22  ;;  %v2415_v1 = vand.u32 4294901760, %v1918_v45  ;;  %4098 = vmatprep.mubr.msk.f32.mxu1 %vm4628_vm0, %v5349_v43  ;;  %v2501_v16 = vand.u32 4294901760, %v5079_v18 }
 0x589   :  { %v2016_v13 = vsub.f32 %v5075_v17, %v5339_v27  ;;  %v2496_v53 = vand.u32 4294901760, %v2495_v25  ;;  %v5350_v14 = vmov 0.0|0.0   ;;  %v2003_v22 = vand.u32 4294901760, %v2002_v44 }
 0x58a   :  { %v5342_v19 = vand.u32 4294901760, %v5095_v6  ;;  %v5104_v51 = vpack.c.bf16 %v2415_v1, %v2412_v12  ;;  %4347 = vmatpush3.bf16.msra.mxu1 %v5093_v56  ;;  %v5107_v35 = vsub.f32 %v1918_v45, %v2415_v1  ;;  %v2502_v25 = vsub.f32 %v5079_v18, %v2501_v16 }
 0x58b   :  { %4348 = vmatprep.subr.bf16.mxu1 %v5350_v14  ;;  %v2017_v45 = vand.u32 4294901760, %v2016_v13  ;;  %v4349_v27 = vpack.c.bf16 %v2010_v2, %v2003_v22  ;;  %v4385_v63 = vpack.c.bf16 %v2496_v53, %v2489_v10  ;;  %v5352_v10 = vand.u32 4294901760, %v5058_v21 }
 0x58c   :  { %v2023_v38 = vsub.f32 %v5095_v6, %v5342_v19  ;;  %4383 = vmatpush3.bf16.msra.mxu0 %v5104_v51  ;;  %v2508_v12 = vand.u32 4294901760, %v5107_v35  ;;  %v2503_v19 = vand.u32 4294901760, %v2502_v25  ;;  %v5354_v13 = vand.u32 4294901760, %v5068_v50 }
 0x58d   :  { %4384 = vmatprep.subr.bf16.mxu0 %v5350_v14 }
 0x58e   :  { %v2024_v1 = vand.u32 4294901760, %v2023_v38  ;;  %v2509_v44 = vsub.f32 %v5107_v35, %v2508_v12 }
 0x58f   :  { %4099 = vmatmul.mubr.f32.vlgmr.msra.gmra.mrb[2].mxu1 %v4753_v57  ;;  %4165 = vmatmul.mubr.f32.vlgmr.msra.gmra.mrb[6].mxu0 %v4753_v57  ;;  %v4355_v57 = vpack.c.bf16 %v5058_v21, %v5051_v7  ;;  %v5356_v21 = vand.u32 4294901760, %v5095_v6 }
 0x590   :  { %4350 = vmatpush3.bf16.msra.mxu1 %v4349_v27  ;;  %4386 = vmatpush3.bf16.msra.mxu0 %v4385_v63  ;;  %v4352_v11 = vpack.c.bf16 %v2024_v1, %v2017_v45  ;;  %v2510_v52 = vand.u32 4294901760, %v2509_v44  ;;  %v4391_v63 = vpack.c.bf16 %v5068_v50, %v5054_v42  ;;  %v5353_v27 = vand.u32 4294901760, %v5054_v42  ;;  %v4568_v50 = vld [vmem:[#allocation4] sm:$0xff] }
 0x591   :  { %4351 = vmatprep.subr.bf16.mxu1 %v5350_v14  ;;  %4387 = vmatprep.subr.bf16.mxu0 %v5350_v14  ;;  %v4406_v42 = vpack.c.bf16 %v2508_v12, %v2501_v16  ;;  %v4572_v1 = vld [vmem:[#allocation4 + $0x20] sm:$0xff] }
 0x592   :  { %4109 = vmatprep.mubr.msk.f32.mxu1 %vm4628_vm0, %v5349_v43  ;;  %4175 = vmatprep.mubr.msk.f32.mxu0 %vm4628_vm0, %v5349_v43  ;;  %v4388_v2 = vpack.c.bf16 %v2510_v52, %v2503_v19  ;;  %v4358_v52 = vpack.c.bf16 %v5095_v6, %v5075_v17  ;;  %v4394_v19 = vpack.c.bf16 %v5107_v35, %v5079_v18  ;;  %v4569_v6 = vld [vmem:[#allocation4 + $0x8] sm:$0xff] }
 0x593   :  { %v4403_v35 = vpack.c.bf16 %v5354_v13, %v5353_v27 }
 0x594   :  { %4353 = vmatpush3.bf16.msra.mxu1 %v4352_v11  ;;  %4389 = vmatpush3.bf16.msra.mxu0 %v4388_v2  ;;  %v4573_v2 = vld [vmem:[#allocation4 + $0x28] sm:$0xff] }
 0x595   :  { %4354 = vmatprep.subr.bf16.mxu1 %v5350_v14  ;;  %4390 = vmatprep.subr.bf16.mxu0 %v5350_v14 }
 0x597   :  { %4110 = vmatmul.mubr.f32.vlgmr.msra.gmra.mrb[2].mxu1 %v4714_v20  ;;  %4176 = vmatmul.mubr.f32.vlgmr.msra.gmra.mrb[6].mxu0 %v4714_v20 }
 0x598   :  { %4356 = vmatpush3.bf16.msra.mxu1 %v4355_v57  ;;  %4392 = vmatpush3.bf16.msra.mxu0 %v4391_v63 }
 0x599   :  { %4357 = vmatprep.subr.bf16.mxu1 %v5350_v14  ;;  %4393 = vmatprep.subr.bf16.mxu0 %v5350_v14 }
 0x59a   :  { %4120 = vmatprep.mubr.msk.f32.mxu1 %vm4628_vm0, %v5349_v43  ;;  %4186 = vmatprep.mubr.msk.f32.mxu0 %vm4628_vm0, %v5349_v43 }
 0x59c   :  { %4359 = vmatpush3.bf16.msra.mxu1 %v4358_v52  ;;  %4395 = vmatpush3.bf16.msra.mxu0 %v4394_v19  ;;  %v4574_v52 = vld [vmem:[#allocation4 + $0x30] sm:$0xff] }
 0x59d   :  { %4360 = vmatprep.subr.bf16.mxu1 %v5350_v14  ;;  %4396 = vmatprep.subr.bf16.mxu0 %v5350_v14 }
 0x59f   :  { %4121 = vmatmul.mubr.f32.vlgmr.msra.gmra.mrb[2].mxu1 %v4717_v23  ;;  %4187 = vmatmul.mubr.f32.vlgmr.msra.gmra.mrb[6].mxu0 %v4717_v23  ;;  %v5351_v23 = vand.u32 4294901760, %v5051_v7  ;;  %v5355_v7 = vand.u32 4294901760, %v5075_v17 }
 0x5a0   :  { %4362 = vmatpush3.bf16.msra.mxu1 %v5056_v47  ;;  %4398 = vmatpush3.bf16.msra.mxu0 %v5066_v49 }
 0x5a1   :  { %4363 = vmatprep.subr.bf16.mxu1 %v5350_v14  ;;  %4399 = vmatprep.subr.bf16.mxu0 %v5350_v14  ;;  %v4367_v53 = vpack.c.bf16 %v5352_v10, %v5351_v23  ;;  %v4370_v22 = vpack.c.bf16 %v5356_v21, %v5355_v7  ;;  %v4575_v23 = vld [vmem:[#allocation4 + $0x38] sm:$0xff] }
 0x5a2   :  { %4131 = vmatprep.mubr.msk.f32.mxu1 %vm4628_vm0, %v5349_v43  ;;  %4197 = vmatprep.mubr.msk.f32.mxu0 %vm4628_vm0, %v5349_v43 }
 0x5a4   :  { %4365 = vmatpush3.bf16.msra.mxu1 %v5093_v56  ;;  %4401 = vmatpush3.bf16.msra.mxu0 %v5104_v51 }
 0x5a5   :  { %4366 = vmatprep.subr.bf16.mxu1 %v5350_v14  ;;  %4402 = vmatprep.subr.bf16.mxu0 %v5350_v14 }
 0x5a7   :  { %4132 = vmatmul.mubr.f32.vlgmr.msra.gmra.mrb[2].mxu1 %v4720_v29  ;;  %4198 = vmatmul.mubr.f32.vlgmr.msra.gmra.mrb[6].mxu0 %v4720_v29 }
 0x5a8   :  { %4368 = vmatpush3.bf16.msra.mxu1 %v4367_v53  ;;  %4404 = vmatpush3.bf16.msra.mxu0 %v4403_v35 }
 0x5a9   :  { %4369 = vmatprep.subr.bf16.mxu1 %v5350_v14  ;;  %4405 = vmatprep.subr.bf16.mxu0 %v5350_v14 }
 0x5aa   :  { %4142 = vmatprep.mubr.msk.f32.mxu1 %vm4628_vm0, %v5349_v43  ;;  %4208 = vmatprep.mubr.msk.f32.mxu0 %vm4628_vm0, %v5349_v43 }
 0x5ac   :  { %4371 = vmatpush3.bf16.msra.mxu1 %v4370_v22  ;;  %4407 = vmatpush3.bf16.msra.mxu0 %v4406_v42 }
 0x5ad   :  { %4372 = vmatprep.subr.bf16.mxu1 %v5350_v14  ;;  %4408 = vmatprep.subr.bf16.mxu0 %v5350_v14 }
 0x5af   :  { %4143 = vmatmul.mubr.f32.vlgmr.msra.gmra.mrb[2].mxu1 %v4714_v20  ;;  %4209 = vmatmul.mubr.f32.vlgmr.msra.gmra.mrb[6].mxu0 %v4714_v20 }
 0x5b0   :  { %4374 = vmatpush3.bf16.msra.mxu1 %v5056_v47  ;;  %4410 = vmatpush3.bf16.msra.mxu0 %v5066_v49 }
 0x5b1   :  { %4375 = vmatprep.subr.bf16.mxu1 %v5350_v14  ;;  %4411 = vmatprep.subr.bf16.mxu0 %v5350_v14 }
 0x5b2   :  { %4153 = vmatprep.mubr.msk.f32.mxu1 %vm4628_vm0, %v5349_v43  ;;  %4219 = vmatprep.mubr.msk.f32.mxu0 %vm4628_vm0, %v5349_v43 }
 0x5b4   :  { %4377 = vmatpush3.bf16.msra.mxu1 %v5093_v56  ;;  %4413 = vmatpush3.bf16.msra.mxu0 %v5104_v51 }
 0x5b7   :  { %4154 = vmatmul.mubr.f32.vlgmr.msra.gmra.mrb[2].mxu1 %v4714_v20  ;;  %4220 = vmatmul.mubr.f32.vlgmr.msra.gmra.mrb[6].mxu0 %v4714_v20  ;;  %v4570_v20 = vld [vmem:[#allocation4 + $0x10] sm:$0xff] }
 0x5b8   :  { %4224 = vmatprep.mubr.f32.mxu1 %v4885_v46  ;;  %v4571_v46 = vld [vmem:[#allocation4 + $0x18] sm:$0xff] }
 0x652   :  { %v1847_v16 = vpop.f32.mrb[12].mxu1 }
 0x653   :  { %v1848_v17 = vadd.f32 %v1847_v16, %v4973_v37  ;;  %v1849_v29 = vpop.f32.mrb[13].mxu1 }
 0x654   :  { %v1850_v47 = vadd.f32 %v1849_v29, %v4976_v39  ;;  %v1851_v49 = vpop.f32.mrb[14].mxu1 }
 0x655   :  { %v1866_v18 = vadd.f32 %v4568_v50, %v1848_v17  ;;  %v1852_v43 = vadd.f32 %v1851_v49, %v4967_v32  ;;  %v1853_v56 = vpop.f32.mrb[15].mxu1 }
 0x656   :  { %v1867_v51 = vadd.f32 %v4569_v6, %v1850_v47  ;;  %v1854_v14 = vadd.f32 %v1853_v56, %v4970_v33 }
 0x657   :  { %1874 = vst [vmem:[#allocation7] sm:$0xff] %v1866_v18  ;;  %v1868_v38 = vadd.f32 %v4570_v20, %v1852_v43 }
 0x658   :  { %1875 = vst [vmem:[#allocation7 + $0x8] sm:$0xff] %v1867_v51  ;;  %v1869_v25 = vadd.f32 %v4571_v46, %v1854_v14 }
 0x659   :  { %1876 = vst [vmem:[#allocation7 + $0x10] sm:$0xff] %v1868_v38 }
 0x65a   :  { %1877 = vst [vmem:[#allocation7 + $0x18] sm:$0xff] %v1869_v25  ;;  %v1857_v37 = vpop.f32.mrb[16].mxu1 }
 0x65b   :  { %v1858_v39 = vadd.f32 %v1857_v37, %v4987_v48  ;;  %v1859_v12 = vpop.f32.mrb[17].mxu1 }
 0x65c   :  { %v1860_v45 = vadd.f32 %v1859_v12, %v4990_v31  ;;  %v1861_v32 = vpop.f32.mrb[18].mxu1 }
 0x65d   :  { %v1870_v44 = vadd.f32 %v4572_v1, %v1858_v39  ;;  %v1862_v11 = vadd.f32 %v1861_v32, %v4993_v30  ;;  %v1863_v33 = vpop.f32.mrb[19].mxu1 }
 0x65e   :  { %v1871_v57 = vadd.f32 %v4573_v2, %v1860_v45  ;;  %v1864_v63 = vadd.f32 %v1863_v33, %v4996_v34  ;;  %v5357_v33 = vld [vmem:[#allocation11_spill] sm:$0xff] }
 0x65f   :  { %1878 = vst [vmem:[#allocation7 + $0x20] sm:$0xff] %v1870_v44  ;;  %v1872_v19 = vadd.f32 %v4574_v52, %v1862_v11 }
 0x660   :  { %1879 = vst [vmem:[#allocation7 + $0x28] sm:$0xff] %v1871_v57  ;;  %v1873_v10 = vadd.f32 %v4575_v23, %v1864_v63  ;;  %v5358_v63 = vld [vmem:[#allocation12_spill] sm:$0xff]  ;;  %v5359_v23 = vld [vmem:[#allocation10_spill] sm:$0xff] }
 0x661   :  { %1880 = vst [vmem:[#allocation7 + $0x30] sm:$0xff] %v1872_v19 }
 0x662   :  { %1881 = vst [vmem:[#allocation7 + $0x38] sm:$0xff] %v1873_v10 }
 0x68a   :  { %v2400_v48 = vpop.f32.mrb[2].mxu1  ;;  %v2886_v53 = vpop.f32.mrb[6].mxu0 }
 0x68b   :  { %v2404_v31 = vmax.f32 %v2400_v48, 0.0  ;;  %v4155_v27 = vpop.f32.mrb[3].mxu1  ;;  %v2890_v13 = vmax.f32 %v2886_v53, 0.0  ;;  %v4221_v35 = vpop.f32.mrb[7].mxu0 }
 0x68c   :  { %v5360_v35 = vmov 0  }
 0x68d   :  { %v2891_v30 = vadd.f32 %v2890_v13, %v2404_v31 }
 0x68f   :  { %v2893_v7 = vsel %vm1064_vm3, %v2891_v30, 0 }
 0x690   :  { %v2896_v21 = vand.u32 4294901760, %v2893_v7 }
 0x692   :  { %v3003_v22 = vsub.f32 %v2893_v7, %v2896_v21  ;;  %4222 = vmatprep.subr.mxu1 %v2896_v21 }
 0x693   :  { %4223 = vmatpush3.msra.mxu1 %v2896_v21 }
 0x694   :  { %4225 = vmatmul.mubr.f32.vlgmr.msra.gmra.mrb[20].mxu1 %v4926_v24  ;;  %v3004_v34 = vand.u32 4294901760, %v3003_v22 }
 0x695   :  { %4227 = vmatprep.mubr.f32.mxu1 %v4930_v26 }
 0x696   :  { %v3005_v42 = vsub.f32 %v3003_v22, %v3004_v34 }
 0x698   :  { %4228 = vmatmul.mubr.f32.gmra.mrb[22].mxu1 %v4933_v28  ;;  %v3006_v16 = vand.u32 4294901760, %v3005_v42 }
 0x699   :  { %4232 = vmatprep.mubr.f32.mxu1 %v4875_v36 }
 0x69a   :  { %4230 = vmatprep.subr.mxu1 %v3006_v16 }
 0x69b   :  { %4231 = vmatpush3.msra.mxu1 %v3006_v16 }
 0x69c   :  { %4233 = vmatmul.mubr.f32.vlgmr.msra.gmra.mrb[20].mxu1 %v4897_v54  ;;  %4238 = vmatprep.subr.mxu1 %v3003_v22 }
 0x69d   :  { %4239 = vmatpush3.msra.mxu1 %v3003_v22  ;;  %4235 = vmatprep.mubr.f32.mxu1 %v4899_v55 }
 0x69e   :  { %4246 = vmatprep.subr.mxu1 %v2896_v21 }
 0x6a0   :  { %4236 = vmatmul.mubr.f32.gmra.mrb[22].mxu1 %v4904_v59 }
 0x6a1   :  { %4240 = vmatprep.mubr.f32.mxu1 %v4878_v40 }
 0x6a4   :  { %4241 = vmatmul.mubr.f32.vlgmr.msra.gmra.mrb[20].mxu1 %v4902_v58 }
 0x6a5   :  { %4247 = vmatpush3.msra.mxu1 %v2896_v21  ;;  %4243 = vmatprep.mubr.f32.mxu1 %v4907_v60 }
 0x6a6   :  { %4254 = vmatprep.subr.mxu1 %v3004_v34 }
 0x6a8   :  { %4244 = vmatmul.mubr.f32.gmra.mrb[22].mxu1 %v4913_v62 }
 0x6a9   :  { %4248 = vmatprep.mubr.f32.mxu1 %v4881_v41 }
 0x6ac   :  { %4249 = vmatmul.mubr.f32.vlgmr.msra.gmra.mrb[20].mxu1 %v4910_v61 }
 0x6ad   :  { %4255 = vmatpush3.msra.mxu1 %v3004_v34  ;;  %4251 = vmatprep.mubr.f32.mxu1 %v4916_v3 }
 0x6ae   :  { %4262 = vmatprep.subr.mxu1 %v2896_v21 }
 0x6b0   :  { %4252 = vmatmul.mubr.f32.gmra.mrb[22].mxu1 %v4921_v15 }
 0x6b1   :  { %4256 = vmatprep.mubr.f32.mxu1 %v4875_v36 }
 0x6b4   :  { %4257 = vmatmul.mubr.f32.vlgmr.msra.gmra.mrb[20].mxu1 %v4897_v54 }
 0x6b5   :  { %4263 = vmatpush3.msra.mxu1 %v2896_v21  ;;  %4259 = vmatprep.mubr.f32.mxu1 %v4899_v55 }
 0x6b8   :  { %4260 = vmatmul.mubr.f32.gmra.mrb[22].mxu1 %v4904_v59 }
 0x6b9   :  { %4264 = vmatprep.mubr.f32.mxu1 %v4875_v36 }
 0x6bc   :  { %4265 = vmatmul.mubr.f32.vlgmr.msra.gmra.mrb[20].mxu1 %v4897_v54 }
 0x6bd   :  { %4267 = vmatprep.mubr.f32.mxu1 %v4899_v55 }
 0x6c0   :  { %4268 = vmatmul.mubr.f32.gmra.mrb[22].mxu1 %v4904_v59 }
 0x78f   :  { %v4266_v40 = vpop.f32.mrb[20].mxu1 }
 0x790   :  { %v3471_v41 = vsub.f32 0.0, %v4266_v40  ;;  %v3448_v58 = vpop.f32.mrb[21].mxu1 }
 0x791   :  { %v3470_v60 = vsub.f32 0.0, %v3448_v58 }
 0x792   :  { %v3476_v61 = vmul.f32 1.442695, %v3471_v41 }
 0x793   :  { %v3474_v62 = vmul.f32 1.442695, %v3470_v60  ;;  %v4269_v3 = vpop.f32.mrb[22].mxu1 }
 0x794   :  { %4536 = vpow2.f32 %v3476_v61  ;;  %v3473_v15 = vsub.f32 0.0, %v4269_v3  ;;  %v3460_v24 = vpop.f32.mrb[23].mxu1 }
 0x795   :  { %4538 = vpow2.f32 %v3474_v62  ;;  %v3472_v26 = vsub.f32 0.0, %v3460_v24 }
 0x796   :  { %v3480_v28 = vmul.f32 1.442695, %v3473_v15 }
 0x797   :  { %v3478_v36 = vmul.f32 1.442695, %v3472_v26 }
 0x798   :  { %4540 = vpow2.f32 %v3480_v28 }
 0x799   :  { %4542 = vpow2.f32 %v3478_v36 }
 0x79e   :  { %v4537_v54 = vpop.eup %4536 }
 0x79f   :  { %v4539_v55 = vpop.eup %4538  ;;  %v3483_v17 = vadd.f32 1.0, %v4537_v54 }
 0x7a0   :  { %v3482_v59 = vadd.f32 1.0, %v4539_v55 }
 0x7a1   :  { %4544 = vrcp.f32 %v3483_v17 }
 0x7a2   :  { %v4541_v29 = vpop.eup %4540  ;;  %4546 = vrcp.f32 %v3482_v59 }
 0x7a3   :  { %v4543_v47 = vpop.eup %4542  ;;  %v3485_v49 = vadd.f32 1.0, %v4541_v29 }
 0x7a4   :  { %v3484_v50 = vadd.f32 1.0, %v4543_v47 }
 0x7a5   :  { %4548 = vrcp.f32 %v3485_v49 }
 0x7a6   :  { %4550 = vrcp.f32 %v3484_v50 }
 0x7ab   :  { %v4545_v18 = vpop.eup %4544 }
 0x7ac   :  { %v4547_v43 = vpop.eup %4546  ;;  %3501 = vperm.xlu1 %4503, %v4545_v18  }
 0x7ad   :  { %3496 = vperm.xlu0 %4502, %v4547_v43  }
 0x7af   :  { %v4549_v56 = vpop.eup %4548 }
 0x7b0   :  { %v4551_v6 = vpop.eup %4550 }
 0x7b1   :  { %3511 = vperm.xlu0 %4502, %v4549_v56   ;;  %3506 = vperm.xlu1 %4503, %v4551_v6  }
 0x82b   :  { %v3502_v51 = vpop.permute.xlu1 %3501 }
 0x82c   :  { %v3516_v14 = vmul.f32 %v3502_v51, %v5017_v8  ;;  %v3517_v20 = vmul.f32 %v3502_v51, %v5019_v9  ;;  %v3497_v38 = vpop.permute.xlu0 %3496 }
 0x82d   :  { %v3514_v46 = vmul.f32 %v3497_v38, %v5010_v5  ;;  %v3515_v25 = vmul.f32 %v3497_v38, %v5012_v0 }
 0x82e   :  { %v5238_v37 = vadd.f32 %v3516_v14, %v5017_v8  ;;  %v5241_v39 = vadd.f32 %v3517_v20, %v5019_v9 }
 0x82f   :  { %v5244_v12 = vadd.f32 %v3514_v46, %v5010_v5  ;;  %v5247_v45 = vadd.f32 %v3515_v25, %v5012_v0 }
 0x830   :  { %v3512_v32 = vpop.permute.xlu0 %3511  ;;  %v3507_v1 = vpop.permute.xlu1 %3506 }
 0x831   :  { %v3530_v44 = vpack.c.bf16 %v5238_v37, %v5244_v12  ;;  %v3521_v11 = vmul.f32 %v3512_v32, %v5036_v4  ;;  %v3519_v2 = vmul.f32 %v3507_v1, %v5357_v33  ;;  %v3531_v57 = vpack.c.bf16 %v5241_v39, %v5247_v45 }
 0x832   :  { %v3520_v52 = vmul.f32 %v3512_v32, %v5358_v63  ;;  %v3518_v10 = vmul.f32 %v3507_v1, %v5359_v23  ;;  %v5361_v32 = vld [vmem:[#allocation13_spill] sm:$0xff] }
 0x833   :  { %v5257_v19 = vadd.f32 %v3521_v11, %v5036_v4  ;;  %v5261_v48 = vadd.f32 %v3519_v2, %v5357_v33  ;;  %3534 = vmatprep.subr.bf16.mxu0 %v3531_v57  ;;  %3566 = vmatprep.mubr.bf16.mxu0 %v3531_v57 }
 0x834   :  { %3535 = vmatpush1.bf16.xpose.msra.mxu0 %v3530_v44  ;;  %v5266_v53 = vadd.f32 %v3520_v52, %v5358_v63  ;;  %v5269_v27 = vadd.f32 %v3518_v10, %v5359_v23 }
 0x835   :  { %v3533_v31 = vpack.c.bf16 %v5257_v19, %v5261_v48 }
 0x836   :  { %v3532_v13 = vpack.c.bf16 %v5266_v53, %v5269_v27 }
 0x837   :  { %3536 = vmatprep.subr.bf16.mxu0 %v3533_v31 }
 0x83c   :  { %3537 = vmatpush1.bf16.xpose.msra.mxu0 %v3532_v13 }
 0x83d   :  { %3639 = vmatprep.subr.bf16.mxu0 %v3531_v57 }
 0x843   :  { %3567 = vmatmul.mubr.bf16.vlgmr.msra.gmra.mrb[8].mxu0 %v3530_v44 }
 0x844   :  { %3574 = vmatprep.mubr.bf16.mxu0 %v3533_v31  ;;  %3640 = vmatpush1.bf16.msra.mxu0 %v3530_v44 }
 0x845   :  { %3641 = vmatprep.subr.bf16.mxu0 %v3533_v31 }
 0x848   :  { %3642 = vmatpush1.bf16.msra.mxu0 %v3532_v13 }
 0x84b   :  { %3575 = vmatmul.mubr.bf16.gmra.mrb[12].mxu0 %v3532_v13 }
 0x84c   :  { %3671 = vmatprep.mubr.bf16.mxu0 %v5360_v35 }
 0x916   :  { %v3568_v30 = vpop.f32.mrb[8].mxu0 }
 0x917   :  { %v3570_v7 = vpop.f32.mrb[9].mxu0  ;;  %v3583_v21 = vsel %vm74_vm1, %v3568_v30, inf }
 0x918   :  { %3584 = vmin.xlane.f32.xlu1 %v3583_v21  ;;  %v3571_v22 = vpop.f32.mrb[10].mxu0 }
 0x919   :  { %v3573_v34 = vpop.f32.mrb[11].mxu0  ;;  %v3586_v42 = vsel %vm74_vm1, %v3571_v22, inf }
 0x91a   :  { %3587 = vmin.xlane.f32.xlu0 %v3586_v42 }
 0x91e   :  { %v3576_v16 = vpop.f32.mrb[12].mxu0 }
 0x91f   :  { %v3578_v40 = vpop.f32.mrb[13].mxu0  ;;  %v3589_v41 = vsel %vm74_vm1, %v3576_v16, inf }
 0x920   :  { %3590 = vmin.xlane.f32.xlu0 %v3589_v41  ;;  %v3579_v58 = vpop.f32.mrb[14].mxu0 }
 0x921   :  { %v3581_v60 = vpop.f32.mrb[15].mxu0  ;;  %v3592_v61 = vsel %vm74_vm1, %v3579_v58, inf }
 0x922   :  { %3593 = vmin.xlane.f32.xlu1 %v3592_v61 }
 0x9a5   :  { %v3585_v62 = vpop.xlane.xlu1 %3584 }
 0x9a6   :  { %v3595_v3 = vsub.f32 %v3585_v62, %v3568_v30 }
 0x9a7   :  { %v3588_v15 = vpop.xlane.xlu0 %3587 }
 0x9a8   :  { %v3599_v24 = vmul.f32 1.442695, %v3595_v3  ;;  %v3596_v26 = vsub.f32 %v3588_v15, %v3571_v22 }
 0x9aa   :  { %4552 = vpow2.f32 %v3599_v24  ;;  %v3601_v28 = vmul.f32 1.442695, %v3596_v26 }
 0x9ac   :  { %4554 = vpow2.f32 %v3601_v28 }
 0x9ad   :  { %v3591_v36 = vpop.xlane.xlu0 %3590 }
 0x9ae   :  { %v3597_v54 = vsub.f32 %v3591_v36, %v3576_v16 }
 0x9af   :  { %v3594_v55 = vpop.xlane.xlu1 %3593 }
 0x9b0   :  { %v3603_v17 = vmul.f32 1.442695, %v3597_v54  ;;  %v3598_v59 = vsub.f32 %v3594_v55, %v3579_v58 }
 0x9b2   :  { %4556 = vpow2.f32 %v3603_v17  ;;  %v3605_v29 = vmul.f32 1.442695, %v3598_v59 }
 0x9b4   :  { %v4553_v47 = vpop.eup %4552  ;;  %4558 = vpow2.f32 %v3605_v29 }
 0x9b5   :  { %v3607_v49 = vsel %vm74_vm1, %v4553_v47, 0.0  ;;  %v3623_v1 = vmul.f32 %v4553_v47, %v5361_v32 }
 0x9b6   :  { %v4555_v50 = vpop.eup %4554  ;;  %3608 = vadd.xlane.f32.xlu0 %v3607_v49 }
 0x9b7   :  { %v3610_v18 = vsel %vm74_vm1, %v4555_v50, 0.0  ;;  %v3624_v44 = vmul.f32 %v4555_v50, %v5361_v32 }
 0x9b8   :  { %3611 = vadd.xlane.f32.xlu1 %v3610_v18 }
 0x9bc   :  { %v4557_v43 = vpop.eup %4556 }
 0x9bd   :  { %v3613_v56 = vsel %vm74_vm1, %v4557_v43, 0.0  ;;  %v3625_v31 = vmul.f32 %v4557_v43, %v5361_v32 }
 0x9be   :  { %v4559_v6 = vpop.eup %4558  ;;  %3614 = vadd.xlane.f32.xlu0 %v3613_v56 }
 0x9bf   :  { %v3616_v51 = vsel %vm74_vm1, %v4559_v6, 0.0  ;;  %v3626_v13 = vmul.f32 %v4559_v6, %v5361_v32 }
 0x9c0   :  { %3617 = vadd.xlane.f32.xlu1 %v3616_v51 }
 0xa43   :  { %v3609_v14 = vpop.xlane.xlu0 %3608 }
 0xa44   :  { %4560 = vrcp.f32 %v3609_v14 }
 0xa45   :  { %v3612_v20 = vpop.xlane.xlu1 %3611 }
 0xa46   :  { %4562 = vrcp.f32 %v3612_v20 }
 0xa4b   :  { %v3615_v38 = vpop.xlane.xlu0 %3614 }
 0xa4c   :  { %4564 = vrcp.f32 %v3615_v38 }
 0xa4d   :  { %v3618_v46 = vpop.xlane.xlu1 %3617 }
 0xa4e   :  { %v4561_v25 = vpop.eup %4560  ;;  %4566 = vrcp.f32 %v3618_v46 }
 0xa4f   :  { %v3627_v2 = vmul.f32 %v4561_v25, %v3623_v1 }
 0xa50   :  { %v4563_v11 = vpop.eup %4562 }
 0xa51   :  { %v3628_v57 = vmul.f32 %v4563_v11, %v3624_v44 }
 0xa53   :  { %v3631_v52 = vpack.c.bf16 %v3628_v57, %v3627_v2 }
 0xa55   :  { %3728 = vmatmul.mubr.msk.bf16.vlgmr.msra.gmra.mrb[16].mxu0 %vm74_vm1, %v3631_v52 }
 0xa56   :  { %v4565_v10 = vpop.eup %4564  ;;  %3681 = vmatprep.mubr.bf16.mxu0 %v5360_v35 }
 0xa57   :  { %v3629_v7 = vmul.f32 %v4565_v10, %v3625_v31 }
 0xa58   :  { %v4567_v30 = vpop.eup %4566 }
 0xa59   :  { %v3630_v21 = vmul.f32 %v4567_v30, %v3626_v13 }
 0xa5b   :  { %v3632_v22 = vpack.c.bf16 %v3630_v21, %v3629_v7 }
 0xa5d   :  { %3729 = vmatmul.mubr.msk.bf16.gmra.mrb[20].mxu0 %vm74_vm1, %v3632_v22 }
 0xb28   :  { %v3673_v34 = vpop.f32.mrb[16].mxu0 }
 0xb29   :  { %v3674_v42 = vadd.f32 %v3673_v34, %v5244_v12  ;;  %v3675_v16 = vpop.f32.mrb[17].mxu0 }
 0xb2a   :  { %v3676_v40 = vadd.f32 %v3675_v16, %v5247_v45  ;;  %v3677_v41 = vpop.f32.mrb[18].mxu0 }
 0xb2b   :  { %v3692_v58 = vadd.f32 %v3674_v42, %v5010_v5  ;;  %v3678_v35 = vadd.f32 %v3677_v41, %v5238_v37  ;;  %v3679_v60 = vpop.f32.mrb[19].mxu0 }
 0xb2c   :  { %v3693_v61 = vadd.f32 %v3676_v40, %v5012_v0  ;;  %v3680_v62 = vadd.f32 %v3679_v60, %v5241_v39 }
 0xb2d   :  { %3701 = vst [vmem:[#allocation7 + $0x40] sm:$0xff] %v3692_v58  ;;  %v3694_v3 = vadd.f32 %v3678_v35, %v5017_v8 }
 0xb2e   :  { %3702 = vst [vmem:[#allocation7 + $0x48] sm:$0xff] %v3693_v61  ;;  %v3695_v15 = vadd.f32 %v3680_v62, %v5019_v9 }
 0xb2f   :  { %3703 = vst [vmem:[#allocation7 + $0x50] sm:$0xff] %v3694_v3 }
 0xb30   :  { %3704 = vst [vmem:[#allocation7 + $0x58] sm:$0xff] %v3695_v15  ;;  %v3683_v12 = vpop.f32.mrb[20].mxu0 }
 0xb31   :  { %v3684_v45 = vadd.f32 %v3683_v12, %v5269_v27  ;;  %v3685_v24 = vpop.f32.mrb[21].mxu0 }
 0xb32   :  { %v3686_v5 = vadd.f32 %v3685_v24, %v5261_v48  ;;  %v3687_v37 = vpop.f32.mrb[22].mxu0 }
 0xb33   :  { %v3696_v26 = vadd.f32 %v3684_v45, %v5359_v23  ;;  %v3688_v0 = vadd.f32 %v3687_v37, %v5266_v53  ;;  %v3689_v39 = vpop.f32.mrb[23].mxu0 }
 0xb34   :  { %v3697_v8 = vadd.f32 %v3686_v5, %v5357_v33  ;;  %v3690_v9 = vadd.f32 %v3689_v39, %v5257_v19 }
 0xb35   :  { %3705 = vst [vmem:[#allocation7 + $0x60] sm:$0xff] %v3696_v26  ;;  %v3698_v28 = vadd.f32 %v3688_v0, %v5358_v63 }
 0xb36   :  { %3706 = vst [vmem:[#allocation7 + $0x68] sm:$0xff] %v3697_v8  ;;  %v3699_v27 = vadd.f32 %v3690_v9, %v5036_v4 }
 0xb37   :  { %3707 = vst [vmem:[#allocation7 + $0x70] sm:$0xff] %v3698_v28 }
 0xb38   :  { %3708 = vst [vmem:[#allocation7 + $0x78] sm:$0xff] %v3699_v27 }
 0xb39   :  { %4609 = shalt.err (!%p4606_p12)
}
 0xb3a   :  { %s4610_s16 = scalar_lea.hbm %s5324_s4, 2048 }
 0xb3b   :  { %p4611_p13 = scmp.ne.s32.totalorder %s5324_s4, %s4610_s16  ;;  %p4614_p0 = scmp.lt.u32.totalorder %s4610_s16, %s5324_s4 }
 0xb3d   :  { %p4616_p1 = pnand %p4614_p0, %p4611_p13 }
 0xb3f   :  { %4619 = shalt.err (!%p4616_p1)
}
 0xb40   :  { %3720 = dma.vmem_to_hbm [thread:$0]  %s3715_s12, 2048, %s5324_s4, [#allocation6], %s4625_s25, %s4625_s25, %s4626_s26  }
 0xb41   :  { %4622 = dma.done.wait [#allocation6], 2048  }
 0xb42   :  { %4623 = vsyncadd [#allocation6], 4294965248 }
 0xb43   :  { %3724 = vsyncpa [#allocation5], 1 }
 0xb44   :  { %3725 = vsyncpa [#allocation6], 1 }

</bundles_post_ra>
